<compile_context>
chip_gen: v7x
topology: tpu7x:2x2x1
jax: 0.10.0
libtpu: 0.0.40
codegen_flags: <defaults>
</compile_context>

<pallas_src>
import math

import jax
import jax.numpy as jnp
from jax import lax
from jax.experimental import pallas as pl
from jax.experimental.pallas import tpu as pltpu


LANE_TB = 128   # batch tile size on the lane axis


# ---------------------------------------------------------------------------
# Fused CRF log-likelihood kernel (one lane-major batch tile per grid step)
# ---------------------------------------------------------------------------
def _crf_loglik_kernel(logits_ref, tags_ref, lens_ref, exp_trans_ref,
                       trans_t_ref, cmax_ref, start_ref, end_ref, out_ref):
    """Per-sequence log-likelihood for one batch tile (batch on lanes).

    logits_ref:    (T, N, TB) f32  emission scores, time-major, batch on lanes
    tags_ref:      (T, 1, TB) i32  gold tags
    lens_ref:      (1, TB)    i32  per-sequence valid length (prefix mask)
    exp_trans_ref: (N, N)     f32  exp(trans - colmax).T   [to, from]
    trans_t_ref:   (N, N)     f32  trans.T                 [to, from]
    cmax_ref:      (N, 1)     f32  colmax[n] = max_p trans[p, n]
    start_ref:     (N, 1)     f32  start transitions (zeros if disabled)
    end_ref:       (N, 1)     f32  end transitions   (zeros if disabled)
    out_ref:       (1, TB)    f32  log_numerator - log_denominator per sequence
    """
    T, N, TB = logits_ref.shape

    exp_trans_t = exp_trans_ref[...]      # (N, N)  exp(trans[p, n] - cmax[n]) at [n, p]
    trans_t = trans_t_ref[...]            # (N, N)  trans[p, q] stored at [q, p]
    cmax = cmax_ref[...]                  # (N, 1)
    start = start_ref[...]                # (N, 1)
    end = end_ref[...]                    # (N, 1)
    lens = lens_ref[...]                  # (1, TB) int32

    # ------------- denominator: forward algorithm (sequential over T) -------
    alpha0 = start + logits_ref[0]        # (N, TB)

    def body(j, alpha):
        emit_j = logits_ref[j]                              # (N, TB)
        m = jnp.max(alpha, axis=0, keepdims=True)           # (1, TB)
        ea = jnp.exp(alpha - m)                             # (N, TB)
        # s[n, b] = sum_p exp(trans[p, n] - cmax[n]) * exp(alpha[p, b] - m[b])
        s = jnp.dot(exp_trans_t, ea, preferred_element_type=jnp.float32)
        s = jnp.maximum(s, 1e-30)                           # guard log(0)
        new_alpha = m + cmax + jnp.log(s) + emit_j          # (N, TB)
        valid = (j < lens).astype(jnp.float32)              # (1, TB)
        return new_alpha * valid + alpha * (1.0 - valid)

    alpha = lax.fori_loop(1, T, body, alpha0,
                          unroll=max(1, min(8, T - 1)))

    stops = alpha + end                                     # (N, TB)
    m2 = jnp.max(stops, axis=0, keepdims=True)
    denom = m2 + jnp.log(jnp.sum(jnp.exp(stops - m2), axis=0, keepdims=True))

    # ------------- numerator: gold path score (vectorized, no recurrence) ---
    logits_all = logits_ref[...]                            # (T, N, TB)
    tags_all = tags_ref[...]                                # (T, 1, TB)

    iota_t = lax.broadcasted_iota(jnp.int32, (T, 1, TB), 0)
    mask3 = (iota_t < lens).astype(jnp.float32)             # (T, 1, TB)
    is_last3 = (iota_t == (lens - 1)).astype(jnp.float32)   # (T, 1, TB)

    iota_n = lax.broadcasted_iota(jnp.int32, (T, N, TB), 1)
    oh = (iota_n == tags_all).astype(jnp.float32)           # (T, N, TB) one-hots

    # emission: sum_t logits[t, tags[t]] * mask[t]  (prefix-mask equivalent of
    # the reference's per-step emit terms + last_input_score * mask[-1])
    emit_sum = jnp.sum(jnp.sum(logits_all * oh * mask3, axis=0),
                       axis=0, keepdims=True)               # (1, TB)
    # start_transitions[tags[0]]
    start_sum = jnp.sum(start * oh[0], axis=0, keepdims=True)      # (1, TB)
    # end_transitions[tags[length - 1]]
    last_oh = jnp.sum(oh * is_last3, axis=0)                       # (N, TB)
    end_sum = jnp.sum(end * last_oh, axis=0, keepdims=True)        # (1, TB)

    # transitions[tags[t], tags[t+1]] * mask[t+1], summed over t  (batched
    # one-hot matmul; runs outside the serial alpha recursion)
    if T > 1:
        oh_cur = oh[:T - 1]                                 # (T-1, N, TB)
        oh_next = oh[1:]                                    # (T-1, N, TB)
        mask_next = mask3[1:]                               # (T-1, 1, TB)
        trans_t_b = jnp.broadcast_to(trans_t[None, :, :], (T - 1, N, N))
        # proj[t, q, b] = trans[tags[t, b], q]
        proj = jnp.einsum('tqp,tpb->tqb', trans_t_b, oh_cur,
                          preferred_element_type=jnp.float32)
        trans_sum = jnp.sum(jnp.sum(proj * oh_next * mask_next, axis=0),
                            axis=0, keepdims=True)          # (1, TB)
    else:
        trans_sum = jnp.zeros((1, TB), jnp.float32)

    numer = start_sum + emit_sum + trans_sum + end_sum      # (1, TB)
    out_ref[...] = (numer - denom).astype(out_ref.dtype)


# ---------------------------------------------------------------------------
# Wrapper: layout plumbing + pallas_call
# ---------------------------------------------------------------------------
def crf_log_likelihood(logits, tags, mask, transitions,
                       start_transitions, end_transitions):
    """logits (B,T,N) f32, tags (B,T) int, mask (B,T) 0/1 prefix mask -> scalar."""
    B, T, N = logits.shape
    logits = logits.astype(jnp.float32)
    tags = tags.astype(jnp.int32)
    if mask is None:
        lengths = jnp.full((B,), T, jnp.int32)
    else:
        lengths = jnp.sum(mask.astype(jnp.int32), axis=1)   # prefix mask assumed

    # Batch tile on the lane axis (128 lanes); pad batch up to a multiple.
    TB = LANE_TB
    Bp = ((B + TB - 1) // TB) * TB
    if Bp != B:
        pad = Bp - B
        logits = jnp.pad(logits, ((0, pad), (0, 0), (0, 0)))
        tags = jnp.pad(tags, ((0, pad), (0, 0)))
        lengths = jnp.pad(lengths, ((0, pad),))
    nb = Bp // TB

    # Layout plumbing (done once by XLA outside the kernel):
    # time-major + batch-on-lanes.
    logits_t = jnp.transpose(logits, (1, 2, 0))             # (T, N, Bp)
    tags_t = jnp.transpose(tags, (1, 0))[:, None, :]        # (T, 1, Bp) int32
    lens2 = lengths.reshape(1, Bp).astype(jnp.int32)        # (1, Bp)

    trans = transitions.astype(jnp.float32)                 # (N, N) [from, to]
    cmax = jnp.max(trans, axis=0)                           # (N,) per-destination max
    exp_trans_t = jnp.exp(trans - cmax[None, :]).T          # (N, N) [to, from], hoisted
    trans_t = trans.T                                       # (N, N) [to, from]
    cmax_col = cmax.reshape(N, 1)
    start_col = start_transitions.reshape(N, 1).astype(jnp.float32)
    end_col = end_transitions.reshape(N, 1).astype(jnp.float32)

    # Explicit VMEM budget (kept well under v7x's 64 MiB physical VMEM).
    block_bytes = 4 * T * N * TB
    vmem_limit = int(min(48 * 2**20, max(16 * 2**20, 12 * block_bytes)))

    # Exp-matmul formulation: ~4*N^2 MXU flops and ~2*N transcendentals
    # per (t, b) element.
    cost = pl.CostEstimate(
        flops=4 * Bp * T * N * N + 12 * Bp * T * N,
        transcendentals=2 * Bp * T * N,
        bytes_accessed=4 * (Bp * T * N + Bp * T + 2 * Bp + 3 * N * N + 3 * N))

    per_seq = pl.pallas_call(
        _crf_loglik_kernel,
        out_shape=jax.ShapeDtypeStruct((1, Bp), jnp.float32),
        grid_spec=pltpu.PrefetchScalarGridSpec(
            num_scalar_prefetch=0,
            grid=(nb,),
            in_specs=[
                pl.BlockSpec((T, N, TB), lambda b: (0, 0, b)),   # logits
                pl.BlockSpec((T, 1, TB), lambda b: (0, 0, b)),   # tags
                pl.BlockSpec((1, TB), lambda b: (0, b)),         # lengths
                pl.BlockSpec((N, N), lambda b: (0, 0)),          # exp(trans - cmax).T
                pl.BlockSpec((N, N), lambda b: (0, 0)),          # trans.T
                pl.BlockSpec((N, 1), lambda b: (0, 0)),          # cmax
                pl.BlockSpec((N, 1), lambda b: (0, 0)),          # start
                pl.BlockSpec((N, 1), lambda b: (0, 0)),          # end
            ],
            out_specs=pl.BlockSpec((1, TB), lambda b: (0, b)),   # lane-dense output
        ),
        compiler_params=pltpu.CompilerParams(
            dimension_semantics=("parallel",),
            vmem_limit_bytes=vmem_limit),
        cost_estimate=cost,
    )(logits_t, tags_t, lens2, exp_trans_t, trans_t, cmax_col,
      start_col, end_col)

    # Drop padded batch lanes BEFORE summing (they hold finite garbage).
    return jnp.sum(per_seq[0, :B])


class CRFPallas:
    """CRF forward() (log-likelihood) with a fused Pallas TPU kernel."""

    def __init__(self, num_tags, key, include_start_end_transitions=True):
        self.num_tags = num_tags
        self.include_start_end_transitions = include_start_end_transitions
        k1, k2, k3 = jax.random.split(key, 3)
        # xavier_normal_ for the (num_tags, num_tags) transition matrix
        std = math.sqrt(2.0 / (num_tags + num_tags))
        self.transitions = std * jax.random.normal(
            k1, (num_tags, num_tags), jnp.float32)
        if include_start_end_transitions:
            self.start_transitions = jax.random.normal(k2, (num_tags,), jnp.float32)
            self.end_transitions = jax.random.normal(k3, (num_tags,), jnp.float32)
        else:
            # zero start/end vectors reproduce the "no start/end transitions" branch
            self.start_transitions = jnp.zeros((num_tags,), jnp.float32)
            self.end_transitions = jnp.zeros((num_tags,), jnp.float32)

    def __call__(self, inputs, tags, mask=None):
        return crf_log_likelihood(inputs, tags, mask, self.transitions,
                                  self.start_transitions, self.end_transitions)


# ---------------------------------------------------------------------------
# Pure-JAX reference (direct port of the PyTorch CRF.forward) for verification
# ---------------------------------------------------------------------------
def crf_reference(logits, tags, mask, transitions, start_transitions, end_transitions):
    B, T, N = logits.shape
    mask = mask.astype(jnp.float32)
    logits_t = jnp.transpose(logits, (1, 0, 2))   # (T, B, N)
    mask_t = jnp.transpose(mask, (1, 0))          # (T, B)
    tags_t = jnp.transpose(tags, (1, 0))          # (T, B)

    # _input_likelihood (denominator)
    alpha = start_transitions[None, :] + logits_t[0]
    for i in range(1, T):
        inner = (alpha[:, :, None] + logits_t[i][:, None, :]
                 + transitions[None, :, :])
        new_alpha = jax.scipy.special.logsumexp(inner, axis=1)
        m = mask_t[i][:, None]
        alpha = new_alpha * m + alpha * (1.0 - m)
    stops = alpha + end_transitions[None, :]
    log_denominator = jax.scipy.special.logsumexp(stops, axis=-1)

    # _joint_likelihood (numerator)
    score = start_transitions[tags_t[0]]
    for i in range(T - 1):
        cur, nxt = tags_t[i], tags_t[i + 1]
        trans_score = transitions[cur, nxt]
        emit_score = jnp.take_along_axis(logits_t[i], cur[:, None], axis=1)[:, 0]
        score = score + trans_score * mask_t[i + 1] + emit_score * mask_t[i]
    last_tag_index = mask_t.sum(0).astype(jnp.int32) - 1
    last_tags = tags_t[last_tag_index, jnp.arange(B)]
    last_input_score = jnp.take_along_axis(
        logits_t[-1], last_tags[:, None], axis=1)[:, 0]
    score = score + end_transitions[last_tags] + last_input_score * mask_t[-1]
    log_numerator = score

    return jnp.sum(log_numerator - log_denominator)


if __name__ == "__main__":
    key = jax.random.PRNGKey(0)
    k_param, k_logits, k_tags = jax.random.split(key, 3)

    B, T, N = 2, 8, 16   # batch, seq_len, num_tags

    crf = CRFPallas(num_tags=N, key=k_param, include_start_end_transitions=True)

    logits = jax.random.normal(k_logits, (B, T, N), jnp.float32)
    tags = jax.random.randint(k_tags, (B, T), 0, N, jnp.int32)
    # sequence 0 is full length, sequence 1 has length 5 (prefix mask)
    lengths = jnp.array([T, 5], jnp.int32)
    mask = (jnp.arange(T)[None, :] < lengths[:, None]).astype(jnp.float32)

    loglik = crf(logits, tags, mask)
    loglik = jax.block_until_ready(loglik)

    loglik_ref = crf_reference(logits, tags, mask, crf.transitions,
                               crf.start_transitions, crf.end_transitions)

    assert jnp.isfinite(loglik), loglik
    # MXU matmuls may round f32 operands; allow a small tolerance vs. the
    # exact-logsumexp reference.
    assert jnp.allclose(loglik, loglik_ref, atol=2e-2, rtol=2e-3), (loglik, loglik_ref)

    print("KERNEL_OK")
</pallas_src>

<mosaic_0001>
module attributes {stable_mosaic.version = 11 : i64} {
  func.func @_crf_loglik_kernel(%arg0: i32, %arg1: memref<8x16x128xf32, #tpu.memory_space<vmem>>, %arg2: memref<8x1x128xi32, #tpu.memory_space<vmem>>, %arg3: memref<1x128xi32, #tpu.memory_space<vmem>>, %arg4: memref<16x16xf32, #tpu.memory_space<vmem>>, %arg5: memref<16x16xf32, #tpu.memory_space<vmem>>, %arg6: memref<16x1xf32, #tpu.memory_space<vmem>>, %arg7: memref<16x1xf32, #tpu.memory_space<vmem>>, %arg8: memref<16x1xf32, #tpu.memory_space<vmem>>, %arg9: memref<1x128xf32, #tpu.memory_space<vmem>>) attributes {dimension_semantics = [#tpu.dimension_semantics<parallel>], iteration_bounds = array<i64: 1>, scalar_prefetch = 0 : i64, scratch_operands = 0 : i64, tpu.core_type = #tpu.core_type<tc>, window_params = [{transform_indices = @transform_0, window_bounds = array<i64: 8, 16, 128>}, {transform_indices = @transform_1, window_bounds = array<i64: 8, 1, 128>}, {transform_indices = @transform_2, window_bounds = array<i64: 1, 128>}, {pipeline_mode = #tpu.pipeline_mode<synchronous>, transform_indices = @transform_3, window_bounds = array<i64: 16, 16>}, {pipeline_mode = #tpu.pipeline_mode<synchronous>, transform_indices = @transform_4, window_bounds = array<i64: 16, 16>}, {pipeline_mode = #tpu.pipeline_mode<synchronous>, transform_indices = @transform_5, window_bounds = array<i64: 16, 1>}, {pipeline_mode = #tpu.pipeline_mode<synchronous>, transform_indices = @transform_6, window_bounds = array<i64: 16, 1>}, {pipeline_mode = #tpu.pipeline_mode<synchronous>, transform_indices = @transform_7, window_bounds = array<i64: 16, 1>}, {transform_indices = @transform_8, window_bounds = array<i64: 1, 128>}]} {
    %c0 = arith.constant 0 : index
    %c0_0 = arith.constant 0 : index
    %0 = vector.load %arg4[%c0, %c0_0] : memref<16x16xf32, #tpu.memory_space<vmem>>, vector<16x16xf32>
    %c0_1 = arith.constant 0 : index
    %c0_2 = arith.constant 0 : index
    %1 = vector.load %arg5[%c0_1, %c0_2] : memref<16x16xf32, #tpu.memory_space<vmem>>, vector<16x16xf32>
    %c0_3 = arith.constant 0 : index
    %c0_4 = arith.constant 0 : index
    %2 = vector.load %arg6[%c0_3, %c0_4] : memref<16x1xf32, #tpu.memory_space<vmem>>, vector<16x1xf32>
    %c0_5 = arith.constant 0 : index
    %c0_6 = arith.constant 0 : index
    %3 = vector.load %arg7[%c0_5, %c0_6] : memref<16x1xf32, #tpu.memory_space<vmem>>, vector<16x1xf32>
    %c0_7 = arith.constant 0 : index
    %c0_8 = arith.constant 0 : index
    %4 = vector.load %arg8[%c0_7, %c0_8] : memref<16x1xf32, #tpu.memory_space<vmem>>, vector<16x1xf32>
    %c0_9 = arith.constant 0 : index
    %c0_10 = arith.constant 0 : index
    %5 = vector.load %arg3[%c0_9, %c0_10] : memref<1x128xi32, #tpu.memory_space<vmem>>, vector<1x128xi32>
    %c0_11 = arith.constant 0 : index
    %c0_12 = arith.constant 0 : index
    %c0_13 = arith.constant 0 : index
    %6 = vector.load %arg1[%c0_11, %c0_12, %c0_13] : memref<8x16x128xf32, #tpu.memory_space<vmem>>, vector<1x16x128xf32>
    %7 = vector.shape_cast %6 : vector<1x16x128xf32> to vector<16x128xf32>
    %8 = vector.broadcast %3 : vector<16x1xf32> to vector<16x128xf32>
    %9 = arith.addf %8, %7 : vector<16x128xf32>
    %c1_i32 = arith.constant 1 : i32
    %10 = arith.index_cast %c1_i32 : i32 to index
    %c0_14 = arith.constant 0 : index
    %c0_15 = arith.constant 0 : index
    %11 = vector.load %arg1[%10, %c0_14, %c0_15] : memref<8x16x128xf32, #tpu.memory_space<vmem>>, vector<1x16x128xf32>
    %12 = vector.shape_cast %11 : vector<1x16x128xf32> to vector<16x128xf32>
    %cst = arith.constant dense<0xFF800000> : vector<128xf32>
    %13 = vector.multi_reduction <maximumf>, %9, %cst [0] : vector<16x128xf32> to vector<128xf32>
    %14 = vector.shape_cast %13 : vector<128xf32> to vector<1x128xf32>
    %15 = vector.broadcast %14 : vector<1x128xf32> to vector<16x128xf32>
    %16 = arith.subf %9, %15 : vector<16x128xf32>
    %17 = math.exp %16 : vector<16x128xf32>
    %cst_16 = arith.constant dense<0.000000e+00> : vector<16x128xf32>
    %18 = tpu.matmul %0, %17, %cst_16 {dimension_numbers = #tpu.dot_dimension_numbers<[1], [0], [0], [1], [0, 0, 1, 1], [], []>} : vector<16x16xf32>, vector<16x128xf32>, vector<16x128xf32> -> vector<16x128xf32>
    %cst_17 = arith.constant 1.000000e-30 : f32
    %19 = vector.broadcast %cst_17 : f32 to vector<16x128xf32>
    %20 = arith.maximumf %18, %19 : vector<16x128xf32>
    %21 = vector.broadcast %14 : vector<1x128xf32> to vector<16x128xf32>
    %22 = vector.broadcast %2 : vector<16x1xf32> to vector<16x128xf32>
    %23 = arith.addf %21, %22 : vector<16x128xf32>
    %24 = math.log %20 : vector<16x128xf32>
    %25 = arith.addf %23, %24 : vector<16x128xf32>
    %26 = arith.addf %25, %12 : vector<16x128xf32>
    %27 = vector.broadcast %c1_i32 : i32 to vector<1x128xi32>
    %28 = arith.cmpi slt, %27, %5 : vector<1x128xi32>
    %29 = arith.extui %28 : vector<1x128xi1> to vector<1x128xi32>
    %30 = arith.sitofp %29 : vector<1x128xi32> to vector<1x128xf32>
    %31 = vector.broadcast %30 : vector<1x128xf32> to vector<16x128xf32>
    %32 = arith.mulf %26, %31 : vector<16x128xf32>
    %cst_18 = arith.constant 1.000000e+00 : f32
    %33 = vector.broadcast %cst_18 : f32 to vector<1x128xf32>
    %34 = arith.subf %33, %30 : vector<1x128xf32>
    %35 = vector.broadcast %34 : vector<1x128xf32> to vector<16x128xf32>
    %36 = arith.mulf %9, %35 : vector<16x128xf32>
    %37 = arith.addf %32, %36 : vector<16x128xf32>
    %c2_i32 = arith.constant 2 : i32
    %38 = arith.index_cast %c2_i32 : i32 to index
    %c0_19 = arith.constant 0 : index
    %c0_20 = arith.constant 0 : index
    %39 = vector.load %arg1[%38, %c0_19, %c0_20] : memref<8x16x128xf32, #tpu.memory_space<vmem>>, vector<1x16x128xf32>
    %40 = vector.shape_cast %39 : vector<1x16x128xf32> to vector<16x128xf32>
    %cst_21 = arith.constant dense<0xFF800000> : vector<128xf32>
    %41 = vector.multi_reduction <maximumf>, %37, %cst_21 [0] : vector<16x128xf32> to vector<128xf32>
    %42 = vector.shape_cast %41 : vector<128xf32> to vector<1x128xf32>
    %43 = vector.broadcast %42 : vector<1x128xf32> to vector<16x128xf32>
    %44 = arith.subf %37, %43 : vector<16x128xf32>
    %45 = math.exp %44 : vector<16x128xf32>
    %cst_22 = arith.constant dense<0.000000e+00> : vector<16x128xf32>
    %46 = tpu.matmul %0, %45, %cst_22 {dimension_numbers = #tpu.dot_dimension_numbers<[1], [0], [0], [1], [0, 0, 1, 1], [], []>} : vector<16x16xf32>, vector<16x128xf32>, vector<16x128xf32> -> vector<16x128xf32>
    %cst_23 = arith.constant 1.000000e-30 : f32
    %47 = vector.broadcast %cst_23 : f32 to vector<16x128xf32>
    %48 = arith.maximumf %46, %47 : vector<16x128xf32>
    %49 = vector.broadcast %42 : vector<1x128xf32> to vector<16x128xf32>
    %50 = vector.broadcast %2 : vector<16x1xf32> to vector<16x128xf32>
    %51 = arith.addf %49, %50 : vector<16x128xf32>
    %52 = math.log %48 : vector<16x128xf32>
    %53 = arith.addf %51, %52 : vector<16x128xf32>
    %54 = arith.addf %53, %40 : vector<16x128xf32>
    %55 = vector.broadcast %c2_i32 : i32 to vector<1x128xi32>
    %56 = arith.cmpi slt, %55, %5 : vector<1x128xi32>
    %57 = arith.extui %56 : vector<1x128xi1> to vector<1x128xi32>
    %58 = arith.sitofp %57 : vector<1x128xi32> to vector<1x128xf32>
    %59 = vector.broadcast %58 : vector<1x128xf32> to vector<16x128xf32>
    %60 = arith.mulf %54, %59 : vector<16x128xf32>
    %cst_24 = arith.constant 1.000000e+00 : f32
    %61 = vector.broadcast %cst_24 : f32 to vector<1x128xf32>
    %62 = arith.subf %61, %58 : vector<1x128xf32>
    %63 = vector.broadcast %62 : vector<1x128xf32> to vector<16x128xf32>
    %64 = arith.mulf %37, %63 : vector<16x128xf32>
    %65 = arith.addf %60, %64 : vector<16x128xf32>
    %c3_i32 = arith.constant 3 : i32
    %66 = arith.index_cast %c3_i32 : i32 to index
    %c0_25 = arith.constant 0 : index
    %c0_26 = arith.constant 0 : index
    %67 = vector.load %arg1[%66, %c0_25, %c0_26] : memref<8x16x128xf32, #tpu.memory_space<vmem>>, vector<1x16x128xf32>
    %68 = vector.shape_cast %67 : vector<1x16x128xf32> to vector<16x128xf32>
    %cst_27 = arith.constant dense<0xFF800000> : vector<128xf32>
    %69 = vector.multi_reduction <maximumf>, %65, %cst_27 [0] : vector<16x128xf32> to vector<128xf32>
    %70 = vector.shape_cast %69 : vector<128xf32> to vector<1x128xf32>
    %71 = vector.broadcast %70 : vector<1x128xf32> to vector<16x128xf32>
    %72 = arith.subf %65, %71 : vector<16x128xf32>
    %73 = math.exp %72 : vector<16x128xf32>
    %cst_28 = arith.constant dense<0.000000e+00> : vector<16x128xf32>
    %74 = tpu.matmul %0, %73, %cst_28 {dimension_numbers = #tpu.dot_dimension_numbers<[1], [0], [0], [1], [0, 0, 1, 1], [], []>} : vector<16x16xf32>, vector<16x128xf32>, vector<16x128xf32> -> vector<16x128xf32>
    %cst_29 = arith.constant 1.000000e-30 : f32
    %75 = vector.broadcast %cst_29 : f32 to vector<16x128xf32>
    %76 = arith.maximumf %74, %75 : vector<16x128xf32>
    %77 = vector.broadcast %70 : vector<1x128xf32> to vector<16x128xf32>
    %78 = vector.broadcast %2 : vector<16x1xf32> to vector<16x128xf32>
    %79 = arith.addf %77, %78 : vector<16x128xf32>
    %80 = math.log %76 : vector<16x128xf32>
    %81 = arith.addf %79, %80 : vector<16x128xf32>
    %82 = arith.addf %81, %68 : vector<16x128xf32>
    %83 = vector.broadcast %c3_i32 : i32 to vector<1x128xi32>
    %84 = arith.cmpi slt, %83, %5 : vector<1x128xi32>
    %85 = arith.extui %84 : vector<1x128xi1> to vector<1x128xi32>
    %86 = arith.sitofp %85 : vector<1x128xi32> to vector<1x128xf32>
    %87 = vector.broadcast %86 : vector<1x128xf32> to vector<16x128xf32>
    %88 = arith.mulf %82, %87 : vector<16x128xf32>
    %cst_30 = arith.constant 1.000000e+00 : f32
    %89 = vector.broadcast %cst_30 : f32 to vector<1x128xf32>
    %90 = arith.subf %89, %86 : vector<1x128xf32>
    %91 = vector.broadcast %90 : vector<1x128xf32> to vector<16x128xf32>
    %92 = arith.mulf %65, %91 : vector<16x128xf32>
    %93 = arith.addf %88, %92 : vector<16x128xf32>
    %c4_i32 = arith.constant 4 : i32
    %94 = arith.index_cast %c4_i32 : i32 to index
    %c0_31 = arith.constant 0 : index
    %c0_32 = arith.constant 0 : index
    %95 = vector.load %arg1[%94, %c0_31, %c0_32] : memref<8x16x128xf32, #tpu.memory_space<vmem>>, vector<1x16x128xf32>
    %96 = vector.shape_cast %95 : vector<1x16x128xf32> to vector<16x128xf32>
    %cst_33 = arith.constant dense<0xFF800000> : vector<128xf32>
    %97 = vector.multi_reduction <maximumf>, %93, %cst_33 [0] : vector<16x128xf32> to vector<128xf32>
    %98 = vector.shape_cast %97 : vector<128xf32> to vector<1x128xf32>
    %99 = vector.broadcast %98 : vector<1x128xf32> to vector<16x128xf32>
    %100 = arith.subf %93, %99 : vector<16x128xf32>
    %101 = math.exp %100 : vector<16x128xf32>
    %cst_34 = arith.constant dense<0.000000e+00> : vector<16x128xf32>
    %102 = tpu.matmul %0, %101, %cst_34 {dimension_numbers = #tpu.dot_dimension_numbers<[1], [0], [0], [1], [0, 0, 1, 1], [], []>} : vector<16x16xf32>, vector<16x128xf32>, vector<16x128xf32> -> vector<16x128xf32>
    %cst_35 = arith.constant 1.000000e-30 : f32
    %103 = vector.broadcast %cst_35 : f32 to vector<16x128xf32>
    %104 = arith.maximumf %102, %103 : vector<16x128xf32>
    %105 = vector.broadcast %98 : vector<1x128xf32> to vector<16x128xf32>
    %106 = vector.broadcast %2 : vector<16x1xf32> to vector<16x128xf32>
    %107 = arith.addf %105, %106 : vector<16x128xf32>
    %108 = math.log %104 : vector<16x128xf32>
    %109 = arith.addf %107, %108 : vector<16x128xf32>
    %110 = arith.addf %109, %96 : vector<16x128xf32>
    %111 = vector.broadcast %c4_i32 : i32 to vector<1x128xi32>
    %112 = arith.cmpi slt, %111, %5 : vector<1x128xi32>
    %113 = arith.extui %112 : vector<1x128xi1> to vector<1x128xi32>
    %114 = arith.sitofp %113 : vector<1x128xi32> to vector<1x128xf32>
    %115 = vector.broadcast %114 : vector<1x128xf32> to vector<16x128xf32>
    %116 = arith.mulf %110, %115 : vector<16x128xf32>
    %cst_36 = arith.constant 1.000000e+00 : f32
    %117 = vector.broadcast %cst_36 : f32 to vector<1x128xf32>
    %118 = arith.subf %117, %114 : vector<1x128xf32>
    %119 = vector.broadcast %118 : vector<1x128xf32> to vector<16x128xf32>
    %120 = arith.mulf %93, %119 : vector<16x128xf32>
    %121 = arith.addf %116, %120 : vector<16x128xf32>
    %c5_i32 = arith.constant 5 : i32
    %122 = arith.index_cast %c5_i32 : i32 to index
    %c0_37 = arith.constant 0 : index
    %c0_38 = arith.constant 0 : index
    %123 = vector.load %arg1[%122, %c0_37, %c0_38] : memref<8x16x128xf32, #tpu.memory_space<vmem>>, vector<1x16x128xf32>
    %124 = vector.shape_cast %123 : vector<1x16x128xf32> to vector<16x128xf32>
    %cst_39 = arith.constant dense<0xFF800000> : vector<128xf32>
    %125 = vector.multi_reduction <maximumf>, %121, %cst_39 [0] : vector<16x128xf32> to vector<128xf32>
    %126 = vector.shape_cast %125 : vector<128xf32> to vector<1x128xf32>
    %127 = vector.broadcast %126 : vector<1x128xf32> to vector<16x128xf32>
    %128 = arith.subf %121, %127 : vector<16x128xf32>
    %129 = math.exp %128 : vector<16x128xf32>
    %cst_40 = arith.constant dense<0.000000e+00> : vector<16x128xf32>
    %130 = tpu.matmul %0, %129, %cst_40 {dimension_numbers = #tpu.dot_dimension_numbers<[1], [0], [0], [1], [0, 0, 1, 1], [], []>} : vector<16x16xf32>, vector<16x128xf32>, vector<16x128xf32> -> vector<16x128xf32>
    %cst_41 = arith.constant 1.000000e-30 : f32
    %131 = vector.broadcast %cst_41 : f32 to vector<16x128xf32>
    %132 = arith.maximumf %130, %131 : vector<16x128xf32>
    %133 = vector.broadcast %126 : vector<1x128xf32> to vector<16x128xf32>
    %134 = vector.broadcast %2 : vector<16x1xf32> to vector<16x128xf32>
    %135 = arith.addf %133, %134 : vector<16x128xf32>
    %136 = math.log %132 : vector<16x128xf32>
    %137 = arith.addf %135, %136 : vector<16x128xf32>
    %138 = arith.addf %137, %124 : vector<16x128xf32>
    %139 = vector.broadcast %c5_i32 : i32 to vector<1x128xi32>
    %140 = arith.cmpi slt, %139, %5 : vector<1x128xi32>
    %141 = arith.extui %140 : vector<1x128xi1> to vector<1x128xi32>
    %142 = arith.sitofp %141 : vector<1x128xi32> to vector<1x128xf32>
    %143 = vector.broadcast %142 : vector<1x128xf32> to vector<16x128xf32>
    %144 = arith.mulf %138, %143 : vector<16x128xf32>
    %cst_42 = arith.constant 1.000000e+00 : f32
    %145 = vector.broadcast %cst_42 : f32 to vector<1x128xf32>
    %146 = arith.subf %145, %142 : vector<1x128xf32>
    %147 = vector.broadcast %146 : vector<1x128xf32> to vector<16x128xf32>
    %148 = arith.mulf %121, %147 : vector<16x128xf32>
    %149 = arith.addf %144, %148 : vector<16x128xf32>
    %c6_i32 = arith.constant 6 : i32
    %150 = arith.index_cast %c6_i32 : i32 to index
    %c0_43 = arith.constant 0 : index
    %c0_44 = arith.constant 0 : index
    %151 = vector.load %arg1[%150, %c0_43, %c0_44] : memref<8x16x128xf32, #tpu.memory_space<vmem>>, vector<1x16x128xf32>
    %152 = vector.shape_cast %151 : vector<1x16x128xf32> to vector<16x128xf32>
    %cst_45 = arith.constant dense<0xFF800000> : vector<128xf32>
    %153 = vector.multi_reduction <maximumf>, %149, %cst_45 [0] : vector<16x128xf32> to vector<128xf32>
    %154 = vector.shape_cast %153 : vector<128xf32> to vector<1x128xf32>
    %155 = vector.broadcast %154 : vector<1x128xf32> to vector<16x128xf32>
    %156 = arith.subf %149, %155 : vector<16x128xf32>
    %157 = math.exp %156 : vector<16x128xf32>
    %cst_46 = arith.constant dense<0.000000e+00> : vector<16x128xf32>
    %158 = tpu.matmul %0, %157, %cst_46 {dimension_numbers = #tpu.dot_dimension_numbers<[1], [0], [0], [1], [0, 0, 1, 1], [], []>} : vector<16x16xf32>, vector<16x128xf32>, vector<16x128xf32> -> vector<16x128xf32>
    %cst_47 = arith.constant 1.000000e-30 : f32
    %159 = vector.broadcast %cst_47 : f32 to vector<16x128xf32>
    %160 = arith.maximumf %158, %159 : vector<16x128xf32>
    %161 = vector.broadcast %154 : vector<1x128xf32> to vector<16x128xf32>
    %162 = vector.broadcast %2 : vector<16x1xf32> to vector<16x128xf32>
    %163 = arith.addf %161, %162 : vector<16x128xf32>
    %164 = math.log %160 : vector<16x128xf32>
    %165 = arith.addf %163, %164 : vector<16x128xf32>
    %166 = arith.addf %165, %152 : vector<16x128xf32>
    %167 = vector.broadcast %c6_i32 : i32 to vector<1x128xi32>
    %168 = arith.cmpi slt, %167, %5 : vector<1x128xi32>
    %169 = arith.extui %168 : vector<1x128xi1> to vector<1x128xi32>
    %170 = arith.sitofp %169 : vector<1x128xi32> to vector<1x128xf32>
    %171 = vector.broadcast %170 : vector<1x128xf32> to vector<16x128xf32>
    %172 = arith.mulf %166, %171 : vector<16x128xf32>
    %cst_48 = arith.constant 1.000000e+00 : f32
    %173 = vector.broadcast %cst_48 : f32 to vector<1x128xf32>
    %174 = arith.subf %173, %170 : vector<1x128xf32>
    %175 = vector.broadcast %174 : vector<1x128xf32> to vector<16x128xf32>
    %176 = arith.mulf %149, %175 : vector<16x128xf32>
    %177 = arith.addf %172, %176 : vector<16x128xf32>
    %c7_i32 = arith.constant 7 : i32
    %178 = arith.index_cast %c7_i32 : i32 to index
    %c0_49 = arith.constant 0 : index
    %c0_50 = arith.constant 0 : index
    %179 = vector.load %arg1[%178, %c0_49, %c0_50] : memref<8x16x128xf32, #tpu.memory_space<vmem>>, vector<1x16x128xf32>
    %180 = vector.shape_cast %179 : vector<1x16x128xf32> to vector<16x128xf32>
    %cst_51 = arith.constant dense<0xFF800000> : vector<128xf32>
    %181 = vector.multi_reduction <maximumf>, %177, %cst_51 [0] : vector<16x128xf32> to vector<128xf32>
    %182 = vector.shape_cast %181 : vector<128xf32> to vector<1x128xf32>
    %183 = vector.broadcast %182 : vector<1x128xf32> to vector<16x128xf32>
    %184 = arith.subf %177, %183 : vector<16x128xf32>
    %185 = math.exp %184 : vector<16x128xf32>
    %cst_52 = arith.constant dense<0.000000e+00> : vector<16x128xf32>
    %186 = tpu.matmul %0, %185, %cst_52 {dimension_numbers = #tpu.dot_dimension_numbers<[1], [0], [0], [1], [0, 0, 1, 1], [], []>} : vector<16x16xf32>, vector<16x128xf32>, vector<16x128xf32> -> vector<16x128xf32>
    %cst_53 = arith.constant 1.000000e-30 : f32
    %187 = vector.broadcast %cst_53 : f32 to vector<16x128xf32>
    %188 = arith.maximumf %186, %187 : vector<16x128xf32>
    %189 = vector.broadcast %182 : vector<1x128xf32> to vector<16x128xf32>
    %190 = vector.broadcast %2 : vector<16x1xf32> to vector<16x128xf32>
    %191 = arith.addf %189, %190 : vector<16x128xf32>
    %192 = math.log %188 : vector<16x128xf32>
    %193 = arith.addf %191, %192 : vector<16x128xf32>
    %194 = arith.addf %193, %180 : vector<16x128xf32>
    %195 = vector.broadcast %c7_i32 : i32 to vector<1x128xi32>
    %196 = arith.cmpi slt, %195, %5 : vector<1x128xi32>
    %197 = arith.extui %196 : vector<1x128xi1> to vector<1x128xi32>
    %198 = arith.sitofp %197 : vector<1x128xi32> to vector<1x128xf32>
    %199 = vector.broadcast %198 : vector<1x128xf32> to vector<16x128xf32>
    %200 = arith.mulf %194, %199 : vector<16x128xf32>
    %cst_54 = arith.constant 1.000000e+00 : f32
    %201 = vector.broadcast %cst_54 : f32 to vector<1x128xf32>
    %202 = arith.subf %201, %198 : vector<1x128xf32>
    %203 = vector.broadcast %202 : vector<1x128xf32> to vector<16x128xf32>
    %204 = arith.mulf %177, %203 : vector<16x128xf32>
    %205 = arith.addf %200, %204 : vector<16x128xf32>
    %c7_i32_55 = arith.constant 7 : i32
    %206 = vector.broadcast %4 : vector<16x1xf32> to vector<16x128xf32>
    %207 = arith.addf %205, %206 : vector<16x128xf32>
    %cst_56 = arith.constant dense<0xFF800000> : vector<128xf32>
    %208 = vector.multi_reduction <maximumf>, %207, %cst_56 [0] : vector<16x128xf32> to vector<128xf32>
    %209 = vector.shape_cast %208 : vector<128xf32> to vector<1x128xf32>
    %210 = vector.broadcast %209 : vector<1x128xf32> to vector<16x128xf32>
    %211 = arith.subf %207, %210 : vector<16x128xf32>
    %212 = math.exp %211 : vector<16x128xf32>
    %cst_57 = arith.constant dense<0.000000e+00> : vector<128xf32>
    %213 = vector.multi_reduction <add>, %212, %cst_57 [0] : vector<16x128xf32> to vector<128xf32>
    %214 = vector.shape_cast %213 : vector<128xf32> to vector<1x128xf32>
    %215 = math.log %214 : vector<1x128xf32>
    %216 = arith.addf %209, %215 : vector<1x128xf32>
    %c0_58 = arith.constant 0 : index
    %c0_59 = arith.constant 0 : index
    %c0_60 = arith.constant 0 : index
    %217 = vector.load %arg1[%c0_58, %c0_59, %c0_60] : memref<8x16x128xf32, #tpu.memory_space<vmem>>, vector<8x16x128xf32>
    %c0_61 = arith.constant 0 : index
    %c0_62 = arith.constant 0 : index
    %c0_63 = arith.constant 0 : index
    %218 = vector.load %arg2[%c0_61, %c0_62, %c0_63] : memref<8x1x128xi32, #tpu.memory_space<vmem>>, vector<8x1x128xi32>
    %219 = tpu.iota {dimensions = array<i32: 0>} : vector<8x1x128xi32>
    %220 = vector.shape_cast %5 : vector<1x128xi32> to vector<1x1x128xi32>
    %221 = vector.broadcast %220 : vector<1x1x128xi32> to vector<8x1x128xi32>
    %222 = arith.cmpi slt, %219, %221 : vector<8x1x128xi32>
    %223 = arith.extui %222 : vector<8x1x128xi1> to vector<8x1x128xi32>
    %224 = arith.sitofp %223 : vector<8x1x128xi32> to vector<8x1x128xf32>
    %c1_i32_64 = arith.constant 1 : i32
    %225 = vector.broadcast %c1_i32_64 : i32 to vector<1x128xi32>
    %226 = arith.subi %5, %225 : vector<1x128xi32>
    %227 = vector.shape_cast %226 : vector<1x128xi32> to vector<1x1x128xi32>
    %228 = vector.broadcast %227 : vector<1x1x128xi32> to vector<8x1x128xi32>
    %229 = arith.cmpi eq, %219, %228 : vector<8x1x128xi32>
    %230 = arith.extui %229 : vector<8x1x128xi1> to vector<8x1x128xi32>
    %231 = arith.sitofp %230 : vector<8x1x128xi32> to vector<8x1x128xf32>
    %232 = tpu.iota {dimensions = array<i32: 1>} : vector<8x16x128xi32>
    %233 = vector.broadcast %218 : vector<8x1x128xi32> to vector<8x16x128xi32>
    %234 = arith.cmpi eq, %232, %233 : vector<8x16x128xi32>
    %235 = arith.extui %234 : vector<8x16x128xi1> to vector<8x16x128xi32>
    %236 = arith.sitofp %235 : vector<8x16x128xi32> to vector<8x16x128xf32>
    %237 = arith.mulf %217, %236 : vector<8x16x128xf32>
    %238 = vector.broadcast %224 : vector<8x1x128xf32> to vector<8x16x128xf32>
    %239 = arith.mulf %237, %238 : vector<8x16x128xf32>
    %cst_65 = arith.constant dense<0.000000e+00> : vector<16x128xf32>
    %240 = vector.multi_reduction <add>, %239, %cst_65 [0] : vector<8x16x128xf32> to vector<16x128xf32>
    %cst_66 = arith.constant dense<0.000000e+00> : vector<128xf32>
    %241 = vector.multi_reduction <add>, %240, %cst_66 [0] : vector<16x128xf32> to vector<128xf32>
    %242 = vector.shape_cast %241 : vector<128xf32> to vector<1x128xf32>
    %243 = vector.extract_strided_slice %236 {offsets = [0, 0, 0], sizes = [1, 16, 128], strides = [1, 1, 1]} : vector<8x16x128xf32> to vector<1x16x128xf32>
    %244 = vector.shape_cast %243 : vector<1x16x128xf32> to vector<16x128xf32>
    %245 = vector.broadcast %3 : vector<16x1xf32> to vector<16x128xf32>
    %246 = arith.mulf %245, %244 : vector<16x128xf32>
    %cst_67 = arith.constant dense<0.000000e+00> : vector<128xf32>
    %247 = vector.multi_reduction <add>, %246, %cst_67 [0] : vector<16x128xf32> to vector<128xf32>
    %248 = vector.shape_cast %247 : vector<128xf32> to vector<1x128xf32>
    %249 = vector.broadcast %231 : vector<8x1x128xf32> to vector<8x16x128xf32>
    %250 = arith.mulf %236, %249 : vector<8x16x128xf32>
    %cst_68 = arith.constant dense<0.000000e+00> : vector<16x128xf32>
    %251 = vector.multi_reduction <add>, %250, %cst_68 [0] : vector<8x16x128xf32> to vector<16x128xf32>
    %252 = vector.broadcast %4 : vector<16x1xf32> to vector<16x128xf32>
    %253 = arith.mulf %252, %251 : vector<16x128xf32>
    %cst_69 = arith.constant dense<0.000000e+00> : vector<128xf32>
    %254 = vector.multi_reduction <add>, %253, %cst_69 [0] : vector<16x128xf32> to vector<128xf32>
    %255 = vector.shape_cast %254 : vector<128xf32> to vector<1x128xf32>
    %256 = vector.extract_strided_slice %236 {offsets = [0, 0, 0], sizes = [7, 16, 128], strides = [1, 1, 1]} : vector<8x16x128xf32> to vector<7x16x128xf32>
    %257 = vector.extract_strided_slice %236 {offsets = [1, 0, 0], sizes = [7, 16, 128], strides = [1, 1, 1]} : vector<8x16x128xf32> to vector<7x16x128xf32>
    %258 = vector.extract_strided_slice %224 {offsets = [1, 0, 0], sizes = [7, 1, 128], strides = [1, 1, 1]} : vector<8x1x128xf32> to vector<7x1x128xf32>
    %259 = vector.shape_cast %1 : vector<16x16xf32> to vector<1x16x16xf32>
    %260 = vector.shape_cast %259 : vector<1x16x16xf32> to vector<1x16x16xf32>
    %261 = vector.broadcast %260 : vector<1x16x16xf32> to vector<7x16x16xf32>
    "tpu.trace_start"() <{level = 10 : i32, message = "tqp,tpb->tqb"}> : () -> ()
    %cst_70 = arith.constant dense<0.000000e+00> : vector<7x16x128xf32>
    %262 = tpu.matmul %261, %256, %cst_70 {dimension_numbers = #tpu.dot_dimension_numbers<[2], [1], [1], [2], [0, 0, 0, 1, 1, 2], [0], [0]>} : vector<7x16x16xf32>, vector<7x16x128xf32>, vector<7x16x128xf32> -> vector<7x16x128xf32>
    "tpu.trace_stop"() : () -> ()
    %263 = arith.mulf %262, %257 : vector<7x16x128xf32>
    %264 = vector.broadcast %258 : vector<7x1x128xf32> to vector<7x16x128xf32>
    %265 = arith.mulf %263, %264 : vector<7x16x128xf32>
    %cst_71 = arith.constant dense<0.000000e+00> : vector<16x128xf32>
    %266 = vector.multi_reduction <add>, %265, %cst_71 [0] : vector<7x16x128xf32> to vector<16x128xf32>
    %cst_72 = arith.constant dense<0.000000e+00> : vector<128xf32>
    %267 = vector.multi_reduction <add>, %266, %cst_72 [0] : vector<16x128xf32> to vector<128xf32>
    %268 = vector.shape_cast %267 : vector<128xf32> to vector<1x128xf32>
    %269 = arith.addf %248, %242 : vector<1x128xf32>
    %270 = arith.addf %269, %268 : vector<1x128xf32>
    %271 = arith.addf %270, %255 : vector<1x128xf32>
    %272 = arith.subf %271, %216 : vector<1x128xf32>
    %c0_73 = arith.constant 0 : index
    %c0_74 = arith.constant 0 : index
    %273 = vector.load %arg9[%c0_73, %c0_74] : memref<1x128xf32, #tpu.memory_space<vmem>>, vector<1x128xf32>
    tpu.vector_store %arg9[%c0_73, %c0_74], %272 {strides = array<i32>} : memref<1x128xf32, #tpu.memory_space<vmem>>, vector<1x128xf32>,
    return
  }
  func.func @transform_0(%arg0: i32) -> (i32, i32, i32) {
    %c0_i32 = arith.constant 0 : i32
    %c0_i32_0 = arith.constant 0 : i32
    %c0_i32_1 = arith.constant 0 : i32
    return %c0_i32, %c0_i32_0, %arg0 : i32, i32, i32
  }
  func.func @transform_1(%arg0: i32) -> (i32, i32, i32) {
    %c0_i32 = arith.constant 0 : i32
    %c0_i32_0 = arith.constant 0 : i32
    %c0_i32_1 = arith.constant 0 : i32
    return %c0_i32, %c0_i32_0, %arg0 : i32, i32, i32
  }
  func.func @transform_2(%arg0: i32) -> (i32, i32) {
    %c0_i32 = arith.constant 0 : i32
    %c0_i32_0 = arith.constant 0 : i32
    return %c0_i32, %arg0 : i32, i32
  }
  func.func @transform_3(%arg0: i32) -> (i32, i32) {
    %c0_i32 = arith.constant 0 : i32
    %c0_i32_0 = arith.constant 0 : i32
    %c0_i32_1 = arith.constant 0 : i32
    return %c0_i32, %c0_i32_0 : i32, i32
  }
  func.func @transform_4(%arg0: i32) -> (i32, i32) {
    %c0_i32 = arith.constant 0 : i32
    %c0_i32_0 = arith.constant 0 : i32
    %c0_i32_1 = arith.constant 0 : i32
    return %c0_i32, %c0_i32_0 : i32, i32
  }
  func.func @transform_5(%arg0: i32) -> (i32, i32) {
    %c0_i32 = arith.constant 0 : i32
    %c0_i32_0 = arith.constant 0 : i32
    %c0_i32_1 = arith.constant 0 : i32
    return %c0_i32, %c0_i32_0 : i32, i32
  }
  func.func @transform_6(%arg0: i32) -> (i32, i32) {
    %c0_i32 = arith.constant 0 : i32
    %c0_i32_0 = arith.constant 0 : i32
    %c0_i32_1 = arith.constant 0 : i32
    return %c0_i32, %c0_i32_0 : i32, i32
  }
  func.func @transform_7(%arg0: i32) -> (i32, i32) {
    %c0_i32 = arith.constant 0 : i32
    %c0_i32_0 = arith.constant 0 : i32
    %c0_i32_1 = arith.constant 0 : i32
    return %c0_i32, %c0_i32_0 : i32, i32
  }
  func.func @transform_8(%arg0: i32) -> (i32, i32) {
    %c0_i32 = arith.constant 0 : i32
    %c0_i32_0 = arith.constant 0 : i32
    return %c0_i32, %arg0 : i32, i32
  }
}

</mosaic_0001>

<bundles_post_ra>
// kernel: tpu_custom_call.1
= control target key start
LH: loop header
LB: loop body
LE: loop exit
PB: predicated region body
PF: predicated region fallthrough
CT: control target
= control target key end

     0   :  { %13 = vsyncpa [#allocation3], 0  ;;  %s3009_s0 = inlined_call_operand.hbm [shape: f32[8,16,128], index: 0, kind: input, shape index: {}]   ;;  %s3010_s1 = inlined_call_operand.vmem [shape: s32[8,1,128], index: 1, kind: input, shape index: {}]   ;;  %s3011_s2 = inlined_call_operand.vmem [shape: s32[1,128], index: 2, kind: input, shape index: {}]   ;;  %s3012_s3 = inlined_call_operand.vmem [shape: f32[16,16], index: 3, kind: input, shape index: {}]   ;;  %s3013_s4 = inlined_call_operand.vmem [shape: f32[16,16], index: 4, kind: input, shape index: {}]   ;;  %s3014_s5 = inlined_call_operand.vmem [shape: f32[16,1], index: 5, kind: input, shape index: {}]   ;;  %s3015_s6 = inlined_call_operand.vmem [shape: f32[16,1], index: 6, kind: input, shape index: {}]   ;;  %s3016_s7 = inlined_call_operand.vmem [shape: f32[16,1], index: 7, kind: input, shape index: {}]   ;;  %s3017_s8 = inlined_call_operand.hbm [shape: f32[1,128], index: 8, kind: output, shape index: {}]  }
   0x1   :  { %14 = vsyncpa [#allocation4], 0  ;;  %s2297_s27 = smov [#allocation2]   ;;  %s2249_s9 = scalar_lea.hbm %s3009_s0, 2048 }
   0x2   :  { %s20_s28 = sshll.u32 %s2297_s27, 4  ;;  %p2250_p0 = scmp.ne.s32.totalorder %s3009_s0, %s2249_s9  ;;  %s21_s28 = int_to_ptr.vmem [resolvable:$true] %s20_s28 }
   0x3   :  { %p2253_p1 = scmp.lt.u32.totalorder %s2249_s9, %s3009_s0 }
   0x5   :  { %p2255_p2 = pnand %p2253_p1, %p2250_p0 }
   0x7   :  { %2258 = shalt.err (!%p2255_p2)
}
   0x8   :  { %s2259_s14 = scalar_lea.vmem %s21_s28, 2048  ;;  %p2264_p4 = scmp.lt.s32.totalorder %s21_s28, %s21_s28 }
   0x9   :  { %p2260_p3 = scmp.ne.s32.totalorder %s21_s28, %s2259_s14  ;;  %p2265_p5 = scmp.lt.s32.totalorder %s2259_s14, %s2259_s14 }
   0xb   :  { %p2266_p6 = por %p2265_p5, %p2264_p4 }
   0xd   :  { %p2267_p7 = pnand %p2266_p6, %p2260_p3 }
   0xf   :  { %2270 = shalt.err (!%p2267_p7)
}
  0x10   :  { %s2298_s15 = smov 128   ;;  %s2299_s16 = smov 8  }
  0x11   :  { %26 = dma.hbm_to_vmem [thread:$0]  %s3009_s0, 2048, %s21_s28, [#allocation3], %s2298_s15, %s2298_s15, %s2299_s16  }
  0x12   :  { %2293 = dma.done.wait [#allocation3], 2048  }
  0x13   :  { %2294 = vsyncadd [#allocation3], 4294965248  ;;  %v193_v0 = vlaneseq  ;;  %v2300_v1 = vmov 0   ;;  %v50_v3 = vld [vmem:[%s3015_s6] sm:$0xff]  ;;  %v51_v6 = vld [vmem:[%s3015_s6 + $0x8] sm:$0xff]  ;;  %v3018_v13 = vmov 0.0  }
  0x14   :  { %2185 = vset.pattern.permute.xlu1 %v2300_v1  ;;  %2184 = vset.pattern.permute.xlu0 %v2300_v1  ;;  %v48_v4 = vld [vmem:[%s3014_s5] sm:$0xff]  ;;  %v49_v7 = vld [vmem:[%s3014_s5 + $0x8] sm:$0xff]  ;;  %v2532_v55 = vld [vmem:[#allocation2 + $0x10] sm:$0xff] }
  0x15   :  { %v2361_v2 = vshrl.u32 %v193_v0, 7  ;;  %59 = vperm.xlu0 %2184, %v50_v3   ;;  %171 = vperm.xlu1 %2185, %v48_v4   ;;  %v54_v8 = vld [vmem:[%s3011_s2] sm:$0x1]  ;;  %v2405_v17 = vld [vmem:[#allocation2 + $0x8] sm:$0xff]  ;;  %v2473_v39 = vld [vmem:[%s3010_s1 + $0x1] ss:$0 sm:$0xff] }
  0x16   :  { %v2381_v9 = vld [vmem:[#allocation2] sm:$0xff]  ;;  %vm189_vm0 = vcmp.gt.s32.totalorder %v54_v8, 1  ;;  %vm1020_vm1 = vcmp.gt.s32.totalorder %v54_v8, 0  ;;  %v2391_v12 = vadd.s32 4294967295, %v54_v8  ;;  %v53_v20 = vld [vmem:[%s3016_s7 + $0x8] sm:$0xff]  ;;  %vm314_vm5 = vcmp.gt.s32.totalorder %v54_v8, 2 }
  0x17   :  { %3052 = vst [vmem:[#allocation8_spill] sm:$0xff] %v2361_v2  ;;  %v2370_v5 = vadd.s32 8, %v2361_v2  ;;  %v2384_v10 = vsub.s32 0, %v2361_v2  ;;  %v2389_v11 = vld [vmem:[%s3010_s1] ss:$0 sm:$0xff]  ;;  %v2396_v14 = vsel %vm189_vm0, 1.0, %v3018_v13 }
  0x18   :  { %3054 = vst [vmem:[#allocation10_spill] sm:$0xff] %v2389_v11  ;;  %vm1083_vm2 = vcmp.eq.s32.totalorder %v2361_v2, %v2389_v11  ;;  %v1905_v15 = vsel %vm1020_vm1, 1.0, %v3018_v13  ;;  %vm1024_vm4 = vcmp.eq.s32.totalorder %v2391_v12, 0  ;;  %v52_v19 = vld [vmem:[%s3016_s7] sm:$0xff]  ;;  %v2434_v27 = vsel %vm314_vm5, 1.0, %v3018_v13  ;;  %3056 = vst [vmem:[#allocation12_spill] sm:$0xff] %v2473_v39 }
  0x19   :  { %3053 = vst [vmem:[#allocation9_spill] sm:$0xff] %v2370_v5  ;;  %v2403_v16 = vsel %vm1083_vm2, 1.0, %v3018_v13  ;;  %vm1084_vm3 = vcmp.eq.s32.totalorder %v2370_v5, %v2389_v11  ;;  %64 = vperm.xlu0 %2184, %v51_v6   ;;  %176 = vperm.xlu1 %2185, %v49_v7   ;;  %v1907_v21 = vsel %vm1024_vm4, 1.0, %v3018_v13  ;;  %v1151_v22 = vrot.slane %v1905_v15, %v2384_v10  ;;  %v2478_v40 = vld [vmem:[%s3010_s1 + $0x2] ss:$0 sm:$0xff]  ;;  %v2542_v59 = vld [vmem:[#allocation2 + $0x30] sm:$0xff] }
  0x1a   :  { %v1131_v18 = vmul.f32 %v2403_v16, %v2381_v9  ;;  %v2424_v23 = vsel %vm1084_vm3, 1.0, %v3018_v13  ;;  %v2428_v24 = vrot.slane %v2396_v14, %v2384_v10  ;;  %v1210_v25 = vrot.slane %v1907_v21, %v2384_v10  ;;  %3057 = vst [vmem:[#allocation13_spill] sm:$0xff] %v2478_v40  ;;  %v2494_v44 = vld [vmem:[%s3010_s1 + $0x3] ss:$0 sm:$0xff]  ;;  %v2499_v45 = vld [vmem:[%s3010_s1 + $0x4] ss:$0 sm:$0xff] }
  0x1b   :  { %v1132_v26 = vmul.f32 %v2424_v23, %v2405_v17  ;;  %v2440_v29 = vrot.slane %v2434_v27, %v2384_v10  ;;  %vm439_vm6 = vcmp.gt.s32.totalorder %v54_v8, 3  ;;  %vm564_vm7 = vcmp.gt.s32.totalorder %v54_v8, 4  ;;  %3059 = vst [vmem:[#allocation15_spill] sm:$0xff] %v2494_v44  ;;  %3060 = vst [vmem:[#allocation16_spill] sm:$0xff] %v2499_v45  ;;  %v2509_v47 = vld [vmem:[%s3010_s1 + $0x5] ss:$0 sm:$0xff] }
  0x1c   :  { %v2436_v28 = vmul.f32 %v1151_v22, %v1131_v18  ;;  %v2443_v30 = vmul.f32 %v2403_v16, %v1210_v25  ;;  %v2448_v32 = vmul.f32 %v2424_v23, %v1210_v25  ;;  %v2451_v33 = vsel %vm439_vm6, 1.0, %v3018_v13  ;;  %3061 = vst [vmem:[#allocation17_spill] sm:$0xff] %v2509_v47  ;;  %v2517_v48 = vld [vmem:[%s3010_s1 + $0x6] ss:$0 sm:$0xff]  ;;  %v2526_v50 = vld [vmem:[%s3010_s1 + $0x7] ss:$0 sm:$0xff] }
  0x1d   :  { %963 = vperm.xlu0 %2184, %v52_v19   ;;  %968 = vperm.xlu1 %2185, %v53_v20   ;;  %v2445_v31 = vmul.f32 %v1151_v22, %v1132_v26  ;;  %v2455_v34 = vrot.slane %v2451_v33, %v2384_v10  ;;  %v2458_v35 = vsel %vm564_vm7, 1.0, %v3018_v13  ;;  %vm689_vm8 = vcmp.gt.s32.totalorder %v54_v8, 5  ;;  %3062 = vst [vmem:[#allocation18_spill] sm:$0xff] %v2517_v48  ;;  %v2540_v58 = vld [vmem:[#allocation2 + $0x20] sm:$0xff]  ;;  %v2554_v61 = vld [vmem:[#allocation2 + $0x50] sm:$0xff] }
  0x1e   :  { %vm814_vm9 = vcmp.gt.s32.totalorder %v54_v8, 6  ;;  %v2462_v36 = vrot.slane %v2458_v35, %v2384_v10  ;;  %v2465_v37 = vsel %vm689_vm8, 1.0, %v3018_v13  ;;  %vm939_vm10 = vcmp.gt.s32.totalorder %v54_v8, 7  ;;  %v2544_v60 = vld [vmem:[#allocation2 + $0x40] sm:$0xff]  ;;  %3064 = vst [vmem:[#allocation20_spill] sm:$0xff] %v2554_v61  ;;  %v1010_v63 = vld [vmem:[#allocation2 + $0x70] sm:$0xff] }
  0x1f   :  { %v2468_v38 = vsel %vm814_vm9, 1.0, %v3018_v13  ;;  %v2482_v41 = vrot.slane %v2465_v37, %v2384_v10  ;;  %v2489_v43 = vsel %vm939_vm10, 1.0, %v3018_v13  ;;  %vm1025_vm11 = vcmp.eq.s32.totalorder %v2391_v12, 1  ;;  %3063 = vst [vmem:[#allocation19_spill] sm:$0xff] %v2544_v60  ;;  %v2556_v62 = vld [vmem:[#allocation2 + $0x60] sm:$0xff] }
  0x20   :  { %3055 = vst [vmem:[#allocation11_spill] sm:$0xff] %v2468_v38  ;;  %v2486_v42 = vrot.slane %v2468_v38, %v2384_v10  ;;  %3058 = vst [vmem:[#allocation14_spill] sm:$0xff] %v2489_v43  ;;  %v2504_v46 = vrot.slane %v2489_v43, %v2384_v10  ;;  %vm1026_vm12 = vcmp.eq.s32.totalorder %v2391_v12, 2  ;;  %vm1027_vm13 = vcmp.eq.s32.totalorder %v2391_v12, 3 }
  0x21   :  { %vm1028_vm14 = vcmp.eq.s32.totalorder %v2391_v12, 4  ;;  %vm1029_vm15 = vcmp.eq.s32.totalorder %v2391_v12, 5  ;;  %vm1030_vm0 = vcmp.eq.s32.totalorder %v2391_v12, 6  ;;  %vm1031_vm1 = vcmp.eq.s32.totalorder %v2391_v12, 7  ;;  %3065 = vst [vmem:[#allocation21_spill] sm:$0xff] %v2556_v62 }
  0x22   :  { %v1908_v49 = vsel %vm1025_vm11, 1.0, %v3018_v13  ;;  %v1909_v51 = vsel %vm1026_vm12, 1.0, %v3018_v13  ;;  %v1910_v52 = vsel %vm1027_vm13, 1.0, %v3018_v13  ;;  %v1911_v53 = vsel %vm1028_vm14, 1.0, %v3018_v13 }
  0x23   :  { %v1912_v54 = vsel %vm1029_vm15, 1.0, %v3018_v13  ;;  %v1913_v56 = vsel %vm1030_vm0, 1.0, %v3018_v13  ;;  %v1914_v57 = vsel %vm1031_vm1, 1.0, %v3018_v13  ;;  %vm1085_vm4 = vcmp.eq.s32.totalorder %v2361_v2, %v2473_v39 }
  0x24   :  { %vm1087_vm5 = vcmp.eq.s32.totalorder %v2361_v2, %v2478_v40  ;;  %vm1089_vm6 = vcmp.eq.s32.totalorder %v2361_v2, %v2494_v44  ;;  %vm1091_vm7 = vcmp.eq.s32.totalorder %v2361_v2, %v2499_v45  ;;  %vm1093_vm8 = vcmp.eq.s32.totalorder %v2361_v2, %v2509_v47 }
  0x25   :  { %vm1095_vm9 = vcmp.eq.s32.totalorder %v2361_v2, %v2517_v48  ;;  %vm1097_vm10 = vcmp.eq.s32.totalorder %v2361_v2, %v2526_v50  ;;  %v2564_v0 = vsel %vm1085_vm4, 1.0, %v3018_v13  ;;  %v2570_v1 = vsel %vm1087_vm5, 1.0, %v3018_v13 }
  0x26   :  { %3066 = vst [vmem:[#allocation22_spill] sm:$0xff] %v2564_v0  ;;  %3067 = vst [vmem:[#allocation23_spill] sm:$0xff] %v2570_v1  ;;  %v2576_v3 = vsel %vm1089_vm6, 1.0, %v3018_v13  ;;  %v2582_v4 = vsel %vm1091_vm7, 1.0, %v3018_v13  ;;  %v2588_v6 = vsel %vm1093_vm8, 1.0, %v3018_v13  ;;  %v2594_v7 = vsel %vm1095_vm9, 1.0, %v3018_v13 }
  0x27   :  { %3068 = vst [vmem:[#allocation24_spill] sm:$0xff] %v2576_v3  ;;  %3069 = vst [vmem:[#allocation25_spill] sm:$0xff] %v2582_v4  ;;  %v2597_v8 = vsel %vm1097_vm10, 1.0, %v3018_v13  ;;  %v1133_v12 = vmul.f32 %v2564_v0, %v2532_v55  ;;  %v1135_v15 = vmul.f32 %v2570_v1, %v2540_v58  ;;  %v1137_v18 = vmul.f32 %v2576_v3, %v2542_v59 }
  0x28   :  { %3070 = vst [vmem:[#allocation26_spill] sm:$0xff] %v2588_v6  ;;  %3071 = vst [vmem:[#allocation27_spill] sm:$0xff] %v2594_v7  ;;  %v1139_v19 = vmul.f32 %v2582_v4, %v2544_v60  ;;  %v1141_v20 = vmul.f32 %v2588_v6, %v2554_v61  ;;  %v1143_v21 = vmul.f32 %v2594_v7, %v2556_v62  ;;  %vm85_vm10 = vcmask 130048  }
  0x29   :  { %3072 = vst [vmem:[#allocation28_spill] sm:$0xff] %v2597_v8  ;;  %v1145_v22 = vmul.f32 %v2597_v8, %v1010_v63  ;;  %v2613_v25 = vrot.slane %v1908_v49, %v2384_v10  ;;  %v1155_v26 = vmul.f32 %v1133_v12, %v2428_v24  ;;  %v1157_v13 = vmul.f32 %v1135_v15, %v2440_v29 }
  0x2a   :  { %v1159_v43 = vmul.f32 %v1137_v18, %v2455_v34  ;;  %v1161_v11 = vmul.f32 %v1139_v19, %v2462_v36  ;;  %v1163_v2 = vmul.f32 %v1141_v20, %v2482_v41  ;;  %v1165_v61 = vmul.f32 %v1143_v21, %v2486_v42 }
  0x2b   :  { %v1167_v38 = vmul.f32 %v1145_v22, %v2504_v46  ;;  %v1218_v62 = vrot.slane %v1909_v51, %v2384_v10  ;;  %v1169_v63 = vadd.f32 %v1155_v26, %v2436_v28  ;;  %v1222_v49 = vrot.slane %v1910_v52, %v2384_v10  ;;  %v2646_v26 = vld [vmem:[#allocation2 + $0x18] sm:$0xff] }
  0x2c   :  { %v1226_v12 = vrot.slane %v1911_v53, %v2384_v10  ;;  %v1230_v15 = vrot.slane %v1912_v54, %v2384_v10  ;;  %v1234_v18 = vrot.slane %v1913_v56, %v2384_v10  ;;  %v1238_v19 = vrot.slane %v1914_v57, %v2384_v10 }
  0x2d   :  { %v1249_v20 = vmul.f32 %v2564_v0, %v2613_v25  ;;  %v1251_v21 = vmul.f32 %v2570_v1, %v1218_v62  ;;  %v1170_v22 = vadd.f32 %v1169_v63, %v1157_v13  ;;  %v1253_v51 = vmul.f32 %v2576_v3, %v1222_v49  ;;  %v2648_v63 = vld [vmem:[#allocation2 + $0x28] sm:$0xff] }
  0x2e   :  { %v1255_v28 = vmul.f32 %v2582_v4, %v1226_v12  ;;  %v1257_v52 = vmul.f32 %v2588_v6, %v1230_v15  ;;  %v1259_v53 = vmul.f32 %v2594_v7, %v1234_v18  ;;  %v1261_v54 = vmul.f32 %v2597_v8, %v1238_v19  ;;  %v2700_v8 = vld [vmem:[#allocation2 + $0x68] sm:$0xff] }
  0x2f   :  { %v1263_v56 = vadd.f32 %v1249_v20, %v2443_v30  ;;  %vm1086_vm11 = vcmp.eq.s32.totalorder %v2370_v5, %v2473_v39  ;;  %v1171_v57 = vadd.f32 %v1170_v22, %v1159_v43  ;;  %vm1088_vm12 = vcmp.eq.s32.totalorder %v2370_v5, %v2478_v40  ;;  %v2656_v43 = vld [vmem:[#allocation2 + $0x38] sm:$0xff]  ;;  %v2658_v20 = vld [vmem:[#allocation2 + $0x48] sm:$0xff]  ;;  %3075 = vst [vmem:[#allocation30_spill] sm:$0xff] %v2700_v8 }
  0x30   :  { %vm1090_vm13 = vcmp.eq.s32.totalorder %v2370_v5, %v2494_v44  ;;  %vm1092_vm14 = vcmp.eq.s32.totalorder %v2370_v5, %v2499_v45  ;;  %vm1094_vm15 = vcmp.eq.s32.totalorder %v2370_v5, %v2509_v47  ;;  %vm1096_vm0 = vcmp.eq.s32.totalorder %v2370_v5, %v2517_v48 }
  0x31   :  { %v1264_v13 = vadd.f32 %v1263_v56, %v1251_v21  ;;  %vm1098_vm1 = vcmp.eq.s32.totalorder %v2370_v5, %v2526_v50  ;;  %v1172_v30 = vadd.f32 %v1171_v57, %v1161_v11  ;;  %v3073_v22 = vmov 0.0   ;;  %v2678_v57 = vld [vmem:[#allocation2 + $0x78] sm:$0xff] }
  0x32   :  { %v2664_v21 = vsel %vm1086_vm11, 1.0, %v3073_v22  ;;  %v2670_v56 = vsel %vm1088_vm12, 1.0, %v3073_v22  ;;  %v2676_v11 = vsel %vm1090_vm13, 1.0, %v3073_v22  ;;  %3074 = vst [vmem:[#allocation29_spill] sm:$0xff] %v2678_v57  ;;  %v2684_v7 = vsel %vm1092_vm14, 1.0, %v3073_v22 }
  0x33   :  { %v1265_v50 = vadd.f32 %v1264_v13, %v1253_v51  ;;  %v2690_v4 = vsel %vm1094_vm15, 1.0, %v3073_v22  ;;  %v2696_v1 = vsel %vm1096_vm0, 1.0, %v3073_v22  ;;  %v1173_v51 = vadd.f32 %v1172_v30, %v1163_v2  ;;  %v2698_v13 = vld [vmem:[#allocation2 + $0x58] sm:$0xff] }
  0x34   :  { %v2703_v6 = vsel %vm1098_vm1, 1.0, %v3073_v22  ;;  %v1134_v3 = vmul.f32 %v2664_v21, %v2646_v26  ;;  %v1136_v0 = vmul.f32 %v2670_v56, %v2648_v63  ;;  %v1138_v44 = vmul.f32 %v2676_v11, %v2656_v43  ;;  %vm2149_vm1 = vmpackc.low %vm1084_vm3, %vm1083_vm2 }
  0x35   :  { %v1266_v47 = vadd.f32 %v1265_v50, %v1255_v28  ;;  %v1140_v2 = vmul.f32 %v2684_v7, %v2658_v20  ;;  %v1174_v30 = vadd.f32 %v1173_v51, %v1165_v61  ;;  %v1146_v39 = vmul.f32 %v2703_v6, %v2678_v57  ;;  %vm2157_vm2 = vmpackc.low %vm1088_vm12, %vm1087_vm5 }
  0x36   :  { %v1156_v22 = vmul.f32 %v1134_v3, %v2428_v24  ;;  %v1142_v45 = vmul.f32 %v2690_v4, %v2698_v13  ;;  %v1144_v40 = vmul.f32 %v2696_v1, %v2700_v8  ;;  %v1158_v28 = vmul.f32 %v1136_v0, %v2440_v29  ;;  %vm2165_vm3 = vmpackc.low %vm1092_vm14, %vm1091_vm7 }
  0x37   :  { %v1267_v48 = vadd.f32 %v1266_v47, %v1257_v52  ;;  %v1175_v50 = vadd.f32 %v1174_v30, %v1167_v38  ;;  %v1160_v5 = vmul.f32 %v1138_v44, %v2455_v34  ;;  %v1162_v60 = vmul.f32 %v1140_v2, %v2462_v36  ;;  %vm2173_vm5 = vmpackc.low %vm1096_vm0, %vm1095_vm9 }
  0x38   :  { %v1168_v61 = vmul.f32 %v1146_v39, %v2504_v46  ;;  %v1176_v57 = vadd.f32 %v1156_v22, %v2445_v31  ;;  %v1250_v47 = vmul.f32 %v2664_v21, %v2613_v25  ;;  %v1252_v3 = vmul.f32 %v2670_v56, %v1218_v62  ;;  %v2737_v31 = vld [vmem:[%s3012_s3] sm:$0xff]  ;;  %vm2153_vm7 = vmpackc.low %vm1086_vm11, %vm1085_vm4 }
  0x39   :  { %v1268_v51 = vadd.f32 %v1267_v48, %v1259_v53  ;;  %v1254_v52 = vmul.f32 %v2676_v11, %v1222_v49  ;;  %v1256_v8 = vmul.f32 %v2684_v7, %v1226_v12  ;;  %v1258_v38 = vmul.f32 %v2690_v4, %v1230_v15  ;;  %2027 = vmatprep.mubr.msk.f32.mxu0 %vm85_vm10, %v2737_v31  ;;  %vm2161_vm9 = vmpackc.low %vm1090_vm13, %vm1089_vm6 }
  0x3a   :  { %v1260_v44 = vmul.f32 %v2696_v1, %v1234_v18  ;;  %v1177_v2 = vadd.f32 %v1176_v57, %v1158_v28  ;;  %v1262_v39 = vmul.f32 %v2703_v6, %v1238_v19  ;;  %v1270_v48 = vadd.f32 %v1250_v47, %v2448_v32  ;;  %2034 = vmatprep.mubr.msk.f32.mxu1 %vm85_vm10, %v2737_v31  ;;  %vm2169_vm4 = vmpackc.low %vm1094_vm15, %vm1093_vm8 }
  0x3b   :  { %v1269_v0 = vadd.f32 %v1268_v51, %v1261_v54  ;;  %v1164_v62 = vmul.f32 %v1142_v45, %v2482_v41  ;;  %v1166_v12 = vmul.f32 %v1144_v40, %v2486_v42 }
  0x3c   :  { %v1178_v25 = vadd.f32 %v1177_v2, %v1160_v5  ;;  %v1271_v49 = vadd.f32 %v1270_v48, %v1252_v3 }
  0x3e   :  { %v1179_v15 = vadd.f32 %v1178_v25, %v1162_v60  ;;  %v1272_v32 = vadd.f32 %v1271_v49, %v1254_v52 }
  0x40   :  { %v1180_v18 = vadd.f32 %v1179_v15, %v1164_v62  ;;  %v1273_v19 = vadd.f32 %v1272_v32, %v1256_v8 }
  0x42   :  { %v1181_v53 = vadd.f32 %v1180_v18, %v1166_v12  ;;  %v1274_v54 = vadd.f32 %v1273_v19, %v1258_v38 }
  0x44   :  { %v1182_v57 = vadd.f32 %v1181_v53, %v1168_v61  ;;  %v1275_v30 = vadd.f32 %v1274_v54, %v1260_v44 }
  0x46   :  { %v1183_v22 = vadd.f32 %v1182_v57, %v1175_v50  ;;  %v1276_v45 = vadd.f32 %v1275_v30, %v1262_v39 }
  0x48   :  { %v1184_v5 = vrot.slane %v1183_v22, 4 }
  0x4a   :  { %v1185_v3 = vadd.f32 %v1184_v5, %v1183_v22 }
  0x4c   :  { %v1186_v61 = vrot.slane %v1185_v3, 2 }
  0x94   :  { %v60_v28 = vpop.permute.xlu0 %59  ;;  %v2745_v51 = vpop.permute.xlu1 %171 }
  0x95   :  { %v1190_v47 = vmul.f32 %v2403_v16, %v60_v28  ;;  %v2751_v40 = vadd.f32 %v60_v28, %v2381_v9  ;;  %v1187_v9 = vadd.f32 %v1186_v61, %v1185_v3  ;;  %v2770_v61 = vld [vmem:[%s3012_s3 + $0x8] sm:$0xff] }
  0x97   :  { %v1188_v32 = vrot.slane %v1187_v9, 1 }
  0x98   :  { %v65_v2 = vpop.permute.xlu0 %64  ;;  %v2748_v48 = vpop.permute.xlu1 %176 }
  0x99   :  { %v68_v60 = vadd.f32 %v65_v2, %v2405_v17  ;;  %v1191_v8 = vmul.f32 %v2424_v23, %v65_v2  ;;  %v1189_v57 = vadd.f32 %v1188_v32, %v1187_v9 }
  0x9b   :  { %v72_v50 = vmax.f32 %v2751_v40, %v68_v60  ;;  %v1192_v52 = vadd.f32 %v1191_v8, %v1190_v47 }
  0x9c   :  { %v2756_v38 = vpop.permute.xlu0 %963  ;;  %v2758_v44 = vpop.permute.xlu1 %968 }
  0x9d   :  { %v73_v16 = vrot.slane %v72_v50, 4  ;;  %v1193_v39 = vrot.slane %v1192_v52, 4  ;;  %v1277_v62 = vmul.f32 %v1269_v0, %v2756_v38  ;;  %v1278_v25 = vmul.f32 %v1276_v45, %v2758_v44 }
  0x9f   :  { %v74_v49 = vmax.f32 %v72_v50, %v73_v16  ;;  %v1194_v12 = vadd.f32 %v1193_v39, %v1192_v52  ;;  %v2762_v17 = vadd.f32 %v1278_v25, %v1277_v62  ;;  %v200_v25 = vsub.f32 1.0, %v2396_v14 }
  0xa1   :  { %v75_v23 = vrot.slane %v74_v49, 2  ;;  %v1195_v15 = vrot.slane %v1194_v12, 2 }
  0xa3   :  { %v76_v18 = vmax.f32 %v74_v49, %v75_v23  ;;  %v1196_v19 = vadd.f32 %v1195_v15, %v1194_v12 }
  0xa5   :  { %v77_v53 = vrot.slane %v76_v18, 1  ;;  %v1197_v54 = vrot.slane %v1196_v19, 1 }
  0xa7   :  { %v78_v30 = vmax.f32 %v76_v18, %v77_v53  ;;  %v1198_v22 = vadd.f32 %v1197_v54, %v1196_v19  ;;  %v325_v18 = vsub.f32 1.0, %v2434_v27  ;;  %v205_v19 = vrot.slane %v200_v25, %v2384_v10 }
  0xa9   :  { %v80_v5 = vsub.f32 %v68_v60, %v78_v30  ;;  %v79_v0 = vsub.f32 %v2751_v40, %v78_v30  ;;  %v2765_v28 = vadd.f32 %v1198_v22, %v1189_v57  ;;  %v180_v49 = vadd.f32 %v2748_v48, %v78_v30 }
  0xaa   :  { %v179_v23 = vadd.f32 %v2745_v51, %v78_v30  ;;  %v208_v22 = vmul.f32 %v205_v19, %v68_v60 }
  0xab   :  { %v83_v45 = vmul.f32 1.442695, %v80_v5  ;;  %v81_v47 = vmul.f32 1.442695, %v79_v0  ;;  %v330_v5 = vrot.slane %v325_v18, %v2384_v10  ;;  %v207_v0 = vmul.f32 %v205_v19, %v2751_v40 }
  0xad   :  { %2186 = vpow2.f32 %v83_v45 }
  0xae   :  { %2188 = vpow2.f32 %v81_v47 }
  0xb7   :  { %v2187_v3 = vpop.eup %2186 }
  0xb8   :  { %v2189_v2 = vpop.eup %2188 }
  0xb9   :  { %v2121_v8 = vpack.c.bf16 %v2187_v3, %v2189_v2 }
  0xbb   :  { %2122 = vmatprep.subr.bf16.mxu0 %v2121_v8 }
  0xbc   :  { %2124 = vmatpush3.bf16.msra.mxu0 %v2121_v8 }
  0xbf   :  { %2028 = vmatmul.mubr.msk.f32.vlgmr.msra.gmra.mrb[0].mxu0 %vm85_vm10, %v2770_v61 }
  0xc0   :  { %2041 = vmatprep.mubr.msk.f32.mxu0 %vm85_vm10, %v2737_v31 }
 0x192   :  { %v2029_v50 = vpop.f32.mrb[0].mxu0 }
 0x193   :  { %v168_v52 = vmax.f32 %v2029_v50, 1e-30  ;;  %v158_v16 = vpop.f32.mrb[1].mxu0 }
 0x194   :  { %v167_v39 = vmax.f32 %v158_v16, 1e-30 }
 0x195   :  { %2190 = vlog2.f32 %v168_v52 }
 0x196   :  { %2192 = vlog2.f32 %v167_v39 }
 0x19f   :  { %v2191_v62 = vpop.eup %2190 }
 0x1a0   :  { %v2193_v9 = vpop.eup %2192  ;;  %v184_v12 = vmul.f32 0.6931472, %v2191_v62 }
 0x1a1   :  { %v182_v15 = vmul.f32 0.6931472, %v2193_v9 }
 0x1a2   :  { %v186_v32 = vadd.f32 %v184_v12, %v180_v49 }
 0x1a3   :  { %v185_v53 = vadd.f32 %v182_v15, %v179_v23 }
 0x1a4   :  { %v188_v54 = vadd.f32 %v2646_v26, %v186_v32 }
 0x1a5   :  { %v187_v57 = vadd.f32 %v2532_v55, %v185_v53 }
 0x1a6   :  { %v199_v14 = vmul.f32 %v2428_v24, %v188_v54 }
 0x1a7   :  { %v198_v30 = vmul.f32 %v2428_v24, %v187_v57 }
 0x1a8   :  { %v210_v45 = vadd.f32 %v208_v22, %v199_v14 }
 0x1a9   :  { %v209_v47 = vadd.f32 %v207_v0, %v198_v30 }
 0x1aa   :  { %v333_v3 = vmul.f32 %v330_v5, %v210_v45 }
 0x1ab   :  { %v214_v27 = vmax.f32 %v209_v47, %v210_v45  ;;  %v332_v2 = vmul.f32 %v330_v5, %v209_v47  ;;  %v450_v5 = vsub.f32 1.0, %v2451_v33 }
 0x1ad   :  { %v215_v8 = vrot.slane %v214_v27, 4 }
 0x1af   :  { %v216_v50 = vmax.f32 %v214_v27, %v215_v8  ;;  %v455_v27 = vrot.slane %v450_v5, %v2384_v10 }
 0x1b1   :  { %v217_v52 = vrot.slane %v216_v50, 2 }
 0x1b3   :  { %v218_v26 = vmax.f32 %v216_v50, %v217_v52 }
 0x1b5   :  { %v219_v16 = vrot.slane %v218_v26, 1 }
 0x1b7   :  { %v220_v55 = vmax.f32 %v218_v26, %v219_v16 }
 0x1b9   :  { %v221_v60 = vsub.f32 %v209_v47, %v220_v55  ;;  %v222_v39 = vsub.f32 %v210_v45, %v220_v55  ;;  %v305_v53 = vadd.f32 %v220_v55, %v2748_v48  ;;  %v304_v57 = vadd.f32 %v220_v55, %v2745_v51 }
 0x1bb   :  { %v223_v62 = vmul.f32 1.442695, %v221_v60  ;;  %v225_v25 = vmul.f32 1.442695, %v222_v39 }
 0x1bd   :  { %2194 = vpow2.f32 %v223_v62 }
 0x1be   :  { %2196 = vpow2.f32 %v225_v25 }
 0x1c7   :  { %v2195_v40 = vpop.eup %2194 }
 0x1c8   :  { %v2197_v9 = vpop.eup %2196 }
 0x1c9   :  { %v2125_v49 = vpack.c.bf16 %v2197_v9, %v2195_v40 }
 0x1cb   :  { %2126 = vmatprep.subr.bf16.mxu1 %v2125_v49 }
 0x1cc   :  { %2128 = vmatpush3.bf16.msra.mxu1 %v2125_v49 }
 0x1cf   :  { %2035 = vmatmul.mubr.msk.f32.vlgmr.msra.gmra.mrb[0].mxu1 %vm85_vm10, %v2770_v61 }
 0x1d0   :  { %2048 = vmatprep.mubr.msk.f32.mxu1 %vm85_vm10, %v2737_v31 }
 0x2a2   :  { %v2036_v12 = vpop.f32.mrb[0].mxu1 }
 0x2a3   :  { %v303_v23 = vmax.f32 %v2036_v12, 1e-30  ;;  %v293_v15 = vpop.f32.mrb[1].mxu1 }
 0x2a4   :  { %v302_v32 = vmax.f32 %v293_v15, 1e-30 }
 0x2a5   :  { %2198 = vlog2.f32 %v303_v23 }
 0x2a6   :  { %2200 = vlog2.f32 %v302_v32 }
 0x2af   :  { %v2199_v18 = vpop.eup %2198 }
 0x2b0   :  { %v2201_v19 = vpop.eup %2200  ;;  %v309_v54 = vmul.f32 0.6931472, %v2199_v18 }
 0x2b1   :  { %v307_v22 = vmul.f32 0.6931472, %v2201_v19 }
 0x2b2   :  { %v311_v14 = vadd.f32 %v309_v54, %v305_v53 }
 0x2b3   :  { %v310_v0 = vadd.f32 %v307_v22, %v304_v57 }
 0x2b4   :  { %v313_v30 = vadd.f32 %v2648_v63, %v311_v14 }
 0x2b5   :  { %v312_v45 = vadd.f32 %v2540_v58, %v310_v0  ;;  %v575_v0 = vsub.f32 1.0, %v2458_v35 }
 0x2b6   :  { %v324_v47 = vmul.f32 %v2440_v29, %v313_v30 }
 0x2b7   :  { %v323_v8 = vmul.f32 %v2440_v29, %v312_v45 }
 0x2b8   :  { %v335_v50 = vadd.f32 %v333_v3, %v324_v47 }
 0x2b9   :  { %v334_v52 = vadd.f32 %v332_v2, %v323_v8  ;;  %v580_v8 = vrot.slane %v575_v0, %v2384_v10 }
 0x2ba   :  { %v458_v26 = vmul.f32 %v455_v27, %v335_v50 }
 0x2bb   :  { %v339_v16 = vmax.f32 %v334_v52, %v335_v50  ;;  %v457_v55 = vmul.f32 %v455_v27, %v334_v52 }
 0x2bd   :  { %v340_v60 = vrot.slane %v339_v16, 4 }
 0x2bf   :  { %v341_v39 = vmax.f32 %v339_v16, %v340_v60 }
 0x2c1   :  { %v342_v62 = vrot.slane %v341_v39, 2 }
 0x2c3   :  { %v343_v33 = vmax.f32 %v341_v39, %v342_v62 }
 0x2c5   :  { %v344_v25 = vrot.slane %v343_v33, 1 }
 0x2c7   :  { %v345_v40 = vmax.f32 %v343_v33, %v344_v25 }
 0x2c9   :  { %v346_v63 = vsub.f32 %v334_v52, %v345_v40  ;;  %v347_v9 = vsub.f32 %v335_v50, %v345_v40  ;;  %v430_v54 = vadd.f32 %v345_v40, %v2748_v48  ;;  %v429_v22 = vadd.f32 %v345_v40, %v2745_v51 }
 0x2cb   :  { %v348_v58 = vmul.f32 1.442695, %v346_v63  ;;  %v350_v49 = vmul.f32 1.442695, %v347_v9 }
 0x2cd   :  { %2202 = vpow2.f32 %v348_v58 }
 0x2ce   :  { %2204 = vpow2.f32 %v350_v49 }
 0x2d7   :  { %v2203_v12 = vpop.eup %2202 }
 0x2d8   :  { %v2205_v23 = vpop.eup %2204 }
 0x2d9   :  { %v2129_v15 = vpack.c.bf16 %v2205_v23, %v2203_v12 }
 0x2db   :  { %2130 = vmatprep.subr.bf16.mxu0 %v2129_v15 }
 0x2dc   :  { %2132 = vmatpush3.bf16.msra.mxu0 %v2129_v15 }
 0x2df   :  { %2042 = vmatmul.mubr.msk.f32.vlgmr.msra.gmra.mrb[2].mxu0 %vm85_vm10, %v2770_v61 }
 0x2e0   :  { %2055 = vmatprep.mubr.msk.f32.mxu0 %vm85_vm10, %v2737_v31 }
 0x3b2   :  { %v2043_v3 = vpop.f32.mrb[2].mxu0 }
 0x3b3   :  { %v428_v2 = vmax.f32 %v2043_v3, 1e-30  ;;  %v418_v32 = vpop.f32.mrb[3].mxu0 }
 0x3b4   :  { %v427_v18 = vmax.f32 %v418_v32, 1e-30 }
 0x3b5   :  { %2206 = vlog2.f32 %v428_v2 }
 0x3b6   :  { %2208 = vlog2.f32 %v427_v18 }
 0x3bf   :  { %v2207_v19 = vpop.eup %2206 }
 0x3c0   :  { %v2209_v53 = vpop.eup %2208  ;;  %v434_v57 = vmul.f32 0.6931472, %v2207_v19 }
 0x3c1   :  { %v432_v14 = vmul.f32 0.6931472, %v2209_v53 }
 0x3c2   :  { %v436_v5 = vadd.f32 %v434_v57, %v430_v54 }
 0x3c3   :  { %v435_v30 = vadd.f32 %v432_v14, %v429_v22  ;;  %v700_v14 = vsub.f32 1.0, %v2465_v37 }
 0x3c4   :  { %v438_v45 = vadd.f32 %v2656_v43, %v436_v5 }
 0x3c5   :  { %v437_v47 = vadd.f32 %v2542_v59, %v435_v30  ;;  %v3076_v30 = vld [vmem:[#allocation19_spill] sm:$0xff] }
 0x3c6   :  { %v449_v27 = vmul.f32 %v2455_v34, %v438_v45 }
 0x3c7   :  { %v448_v50 = vmul.f32 %v2455_v34, %v437_v47 }
 0x3c8   :  { %v460_v52 = vadd.f32 %v458_v26, %v449_v27  ;;  %v705_v27 = vrot.slane %v700_v14, %v2384_v10  ;;  %v3078_v14 = vld [vmem:[#allocation20_spill] sm:$0xff] }
 0x3c9   :  { %v459_v16 = vadd.f32 %v457_v55, %v448_v50 }
 0x3ca   :  { %v583_v60 = vmul.f32 %v580_v8, %v460_v52 }
 0x3cb   :  { %v464_v39 = vmax.f32 %v459_v16, %v460_v52  ;;  %v582_v62 = vmul.f32 %v580_v8, %v459_v16 }
 0x3cd   :  { %v465_v33 = vrot.slane %v464_v39, 4 }
 0x3cf   :  { %v466_v25 = vmax.f32 %v464_v39, %v465_v33 }
 0x3d1   :  { %v467_v40 = vrot.slane %v466_v25, 2 }
 0x3d3   :  { %v468_v35 = vmax.f32 %v466_v25, %v467_v40 }
 0x3d5   :  { %v469_v63 = vrot.slane %v468_v35, 1 }
 0x3d7   :  { %v470_v9 = vmax.f32 %v468_v35, %v469_v63 }
 0x3d9   :  { %v471_v43 = vsub.f32 %v459_v16, %v470_v9  ;;  %v472_v58 = vsub.f32 %v460_v52, %v470_v9  ;;  %v555_v19 = vadd.f32 %v470_v9, %v2748_v48  ;;  %v554_v54 = vadd.f32 %v470_v9, %v2745_v51 }
 0x3db   :  { %v473_v59 = vmul.f32 1.442695, %v471_v43  ;;  %v475_v49 = vmul.f32 1.442695, %v472_v58 }
 0x3dd   :  { %2210 = vpow2.f32 %v473_v59 }
 0x3de   :  { %2212 = vpow2.f32 %v475_v49 }
 0x3e7   :  { %v2211_v12 = vpop.eup %2210 }
 0x3e8   :  { %v2213_v23 = vpop.eup %2212 }
 0x3e9   :  { %v2133_v15 = vpack.c.bf16 %v2213_v23, %v2211_v12 }
 0x3eb   :  { %2134 = vmatprep.subr.bf16.mxu1 %v2133_v15 }
 0x3ec   :  { %2136 = vmatpush3.bf16.msra.mxu1 %v2133_v15 }
 0x3ef   :  { %2049 = vmatmul.mubr.msk.f32.vlgmr.msra.gmra.mrb[2].mxu1 %vm85_vm10, %v2770_v61 }
 0x3f0   :  { %2062 = vmatprep.mubr.msk.f32.mxu1 %vm85_vm10, %v2737_v31 }
 0x4c2   :  { %v2050_v26 = vpop.f32.mrb[2].mxu1 }
 0x4c3   :  { %v553_v55 = vmax.f32 %v2050_v26, 1e-30  ;;  %v543_v3 = vpop.f32.mrb[3].mxu1 }
 0x4c4   :  { %v552_v2 = vmax.f32 %v543_v3, 1e-30 }
 0x4c5   :  { %2214 = vlog2.f32 %v553_v55 }
 0x4c6   :  { %2216 = vlog2.f32 %v552_v2 }
 0x4cf   :  { %v2215_v32 = vpop.eup %2214 }
 0x4d0   :  { %v2217_v18 = vpop.eup %2216  ;;  %v559_v53 = vmul.f32 0.6931472, %v2215_v32 }
 0x4d1   :  { %v557_v57 = vmul.f32 0.6931472, %v2217_v18 }
 0x4d2   :  { %v561_v22 = vadd.f32 %v559_v53, %v555_v19 }
 0x4d3   :  { %v560_v5 = vadd.f32 %v557_v57, %v554_v54  ;;  %v3077_v54 = vld [vmem:[#allocation11_spill] sm:$0xff] }
 0x4d4   :  { %v563_v0 = vadd.f32 %v2658_v20, %v561_v22  ;;  %v825_v57 = vsub.f32 1.0, %v3077_v54 }
 0x4d5   :  { %v562_v45 = vadd.f32 %v3076_v30, %v560_v5 }
 0x4d6   :  { %v574_v47 = vmul.f32 %v2462_v36, %v563_v0  ;;  %v830_v30 = vrot.slane %v825_v57, %v2384_v10 }
 0x4d7   :  { %v573_v8 = vmul.f32 %v2462_v36, %v562_v45 }
 0x4d8   :  { %v585_v50 = vadd.f32 %v583_v60, %v574_v47 }
 0x4d9   :  { %v584_v52 = vadd.f32 %v582_v62, %v573_v8 }
 0x4da   :  { %v708_v16 = vmul.f32 %v705_v27, %v585_v50 }
 0x4db   :  { %v589_v39 = vmax.f32 %v584_v52, %v585_v50  ;;  %v707_v33 = vmul.f32 %v705_v27, %v584_v52 }
 0x4dd   :  { %v590_v25 = vrot.slane %v589_v39, 4 }
 0x4df   :  { %v591_v40 = vmax.f32 %v589_v39, %v590_v25 }
 0x4e1   :  { %v592_v35 = vrot.slane %v591_v40, 2 }
 0x4e3   :  { %v593_v37 = vmax.f32 %v591_v40, %v592_v35 }
 0x4e5   :  { %v594_v63 = vrot.slane %v593_v37, 1 }
 0x4e7   :  { %v595_v9 = vmax.f32 %v593_v37, %v594_v63 }
 0x4e9   :  { %v596_v20 = vsub.f32 %v584_v52, %v595_v9  ;;  %v597_v43 = vsub.f32 %v585_v50, %v595_v9  ;;  %v680_v2 = vadd.f32 %v595_v9, %v2748_v48  ;;  %v679_v18 = vadd.f32 %v595_v9, %v2745_v51 }
 0x4eb   :  { %v598_v58 = vmul.f32 1.442695, %v596_v20  ;;  %v600_v59 = vmul.f32 1.442695, %v597_v43 }
 0x4ed   :  { %2218 = vpow2.f32 %v598_v58 }
 0x4ee   :  { %2220 = vpow2.f32 %v600_v59 }
 0x4f7   :  { %v2219_v49 = vpop.eup %2218 }
 0x4f8   :  { %v2221_v12 = vpop.eup %2220 }
 0x4f9   :  { %v2137_v23 = vpack.c.bf16 %v2221_v12, %v2219_v49 }
 0x4fb   :  { %2138 = vmatprep.subr.bf16.mxu0 %v2137_v23 }
 0x4fc   :  { %2140 = vmatpush3.bf16.msra.mxu0 %v2137_v23  ;;  %v2302_v23 = vmov 1.0|1.0  }
 0x4ff   :  { %2056 = vmatmul.mubr.msk.f32.vlgmr.msra.gmra.mrb[4].mxu0 %vm85_vm10, %v2770_v61 }
 0x500   :  { %2069 = vmatprep.mubr.msk.f32.mxu0 %vm85_vm10, %v2737_v31 }
 0x5d2   :  { %v2057_v60 = vpop.f32.mrb[4].mxu0 }
 0x5d3   :  { %v678_v62 = vmax.f32 %v2057_v60, 1e-30  ;;  %v668_v15 = vpop.f32.mrb[5].mxu0  ;;  %v2852_v60 = vld [vmem:[%s3013_s4] sm:$0xff] }
 0x5d4   :  { %v677_v26 = vmax.f32 %v668_v15, 1e-30 }
 0x5d5   :  { %2222 = vlog2.f32 %v678_v62  ;;  %v2859_v62 = vld [vmem:[%s3013_s4 + $0x8] sm:$0xff]  ;;  %s2303_s4 = smov [#allocation5]  }
 0x5d6   :  { %2224 = vlog2.f32 %v677_v26  ;;  %s1875_s27 = sshll.u32 %s2303_s4, 4  ;;  %s1876_s27 = int_to_ptr.vmem [resolvable:$true] %s1875_s27 }
 0x5d7   :  { %s2271_s28 = scalar_lea.vmem %s1876_s27, 16  ;;  %s2275_s29 = scalar_lea.vmem %s1876_s27, 32 }
 0x5d8   :  { %p2272_p8 = scmp.ne.s32.totalorder %s1876_s27, %s2271_s28  ;;  %p2276_p9 = scmp.lt.s32.totalorder %s1876_s27, %s1876_s27 }
 0x5d9   :  { %p2277_p10 = scmp.lt.s32.totalorder %s2275_s29, %s2271_s28 }
 0x5db   :  { %p2278_p11 = por %p2277_p10, %p2276_p9 }
 0x5dd   :  { %p2279_p12 = pnand %p2278_p11, %p2272_p8 }
 0x5df   :  { %v2223_v55 = vpop.eup %2222 }
 0x5e0   :  { %v2225_v3 = vpop.eup %2224  ;;  %v684_v32 = vmul.f32 0.6931472, %v2223_v55 }
 0x5e1   :  { %v682_v19 = vmul.f32 0.6931472, %v2225_v3 }
 0x5e2   :  { %v686_v53 = vadd.f32 %v684_v32, %v680_v2 }
 0x5e3   :  { %v685_v22 = vadd.f32 %v682_v19, %v679_v18 }
 0x5e4   :  { %v688_v31 = vadd.f32 %v2698_v13, %v686_v53 }
 0x5e5   :  { %v687_v5 = vadd.f32 %v3078_v14, %v685_v22 }
 0x5e6   :  { %v699_v0 = vmul.f32 %v2482_v41, %v688_v31 }
 0x5e7   :  { %v698_v45 = vmul.f32 %v2482_v41, %v687_v5  ;;  %v3085_v5 = vld [vmem:[#allocation14_spill] sm:$0xff] }
 0x5e8   :  { %v710_v47 = vadd.f32 %v708_v16, %v699_v0  ;;  %v950_v0 = vsub.f32 1.0, %v3085_v5 }
 0x5e9   :  { %v709_v27 = vadd.f32 %v707_v33, %v698_v45  ;;  %v3086_v45 = vld [vmem:[#allocation30_spill] sm:$0xff] }
 0x5ea   :  { %v2835_v8 = vmul.f32 %v830_v30, %v710_v47 }
 0x5eb   :  { %v714_v50 = vmax.f32 %v709_v27, %v710_v47  ;;  %v2837_v52 = vmul.f32 %v830_v30, %v709_v27 }
 0x5ed   :  { %v715_v39 = vrot.slane %v714_v50, 4 }
 0x5ef   :  { %v716_v25 = vmax.f32 %v714_v50, %v715_v39 }
 0x5f1   :  { %v717_v40 = vrot.slane %v716_v25, 2 }
 0x5f3   :  { %v718_v35 = vmax.f32 %v716_v25, %v717_v40  ;;  %v955_v25 = vrot.slane %v950_v0, %v2384_v10 }
 0x5f5   :  { %v719_v13 = vrot.slane %v718_v35, 1 }
 0x5f7   :  { %v720_v37 = vmax.f32 %v718_v35, %v719_v13 }
 0x5f9   :  { %v721_v63 = vsub.f32 %v709_v27, %v720_v37  ;;  %v722_v9 = vsub.f32 %v710_v47, %v720_v37  ;;  %v805_v54 = vadd.f32 %v720_v37, %v2748_v48  ;;  %v804_v22 = vadd.f32 %v720_v37, %v2745_v51  ;;  %v3087_v27 = vld [vmem:[#allocation21_spill] sm:$0xff] }
 0x5fb   :  { %v723_v20 = vmul.f32 1.442695, %v721_v63  ;;  %v725_v43 = vmul.f32 1.442695, %v722_v9 }
 0x5fd   :  { %2226 = vpow2.f32 %v723_v20 }
 0x5fe   :  { %2228 = vpow2.f32 %v725_v43 }
 0x607   :  { %v2227_v58 = vpop.eup %2226 }
 0x608   :  { %v2229_v16 = vpop.eup %2228 }
 0x609   :  { %v2141_v33 = vpack.c.bf16 %v2229_v16, %v2227_v58 }
 0x60b   :  { %2142 = vmatprep.subr.bf16.mxu1 %v2141_v33 }
 0x60c   :  { %2144 = vmatpush3.bf16.msra.mxu1 %v2141_v33 }
 0x60d   :  { %2150 = vmatprep.subr.msk.bf16.mxu1 %vm2149_vm1, %v2302_v23 }
 0x60f   :  { %2063 = vmatmul.mubr.msk.f32.vlgmr.msra.gmra.mrb[4].mxu1 %vm85_vm10, %v2770_v61 }
 0x610   :  { %2152 = vmatpush3.bf16.msk.msra.mxu1 %vm2149_vm1, %v2302_v23  ;;  %2076 = vmatprep.mubr.msk.f32.mxu1 %vm85_vm10, %v2852_v60 }
 0x611   :  { %2158 = vmatprep.subr.msk.bf16.mxu1 %vm2157_vm2, %v2302_v23 }
 0x613   :  { %2077 = vmatmul.mubr.msk.f32.vlgmr.msra.gmra.mrb[6].mxu1 %vm85_vm10, %v2859_v62 }
 0x614   :  { %2160 = vmatpush3.bf16.msk.msra.mxu1 %vm2157_vm2, %v2302_v23  ;;  %2090 = vmatprep.mubr.msk.f32.mxu1 %vm85_vm10, %v2852_v60 }
 0x615   :  { %2166 = vmatprep.subr.msk.bf16.mxu1 %vm2165_vm3, %v2302_v23 }
 0x617   :  { %2091 = vmatmul.mubr.msk.f32.vlgmr.msra.gmra.mrb[8].mxu1 %vm85_vm10, %v2859_v62 }
 0x618   :  { %2168 = vmatpush3.bf16.msk.msra.mxu1 %vm2165_vm3, %v2302_v23  ;;  %2104 = vmatprep.mubr.msk.f32.mxu1 %vm85_vm10, %v2852_v60 }
 0x619   :  { %2174 = vmatprep.subr.msk.bf16.mxu1 %vm2173_vm5, %v2302_v23 }
 0x61b   :  { %2105 = vmatmul.mubr.msk.f32.vlgmr.msra.gmra.mrb[10].mxu1 %vm85_vm10, %v2859_v62 }
 0x61c   :  { %2176 = vmatpush3.bf16.msk.msra.mxu1 %vm2173_vm5, %v2302_v23  ;;  %2118 = vmatprep.mubr.msk.f32.mxu1 %vm85_vm10, %v2852_v60 }
 0x61f   :  { %2119 = vmatmul.mubr.msk.f32.vlgmr.msra.gmra.mrb[12].mxu1 %vm85_vm10, %v2859_v62 }
 0x6e2   :  { %v2064_v3 = vpop.f32.mrb[4].mxu1 }
 0x6e3   :  { %v803_v2 = vmax.f32 %v2064_v3, 1e-30  ;;  %v793_v32 = vpop.f32.mrb[5].mxu1 }
 0x6e4   :  { %v802_v18 = vmax.f32 %v793_v32, 1e-30 }
 0x6e5   :  { %2230 = vlog2.f32 %v803_v2 }
 0x6e6   :  { %2232 = vlog2.f32 %v802_v18 }
 0x6ef   :  { %v2231_v19 = vpop.eup %2230 }
 0x6f0   :  { %v2233_v53 = vpop.eup %2232  ;;  %v809_v57 = vmul.f32 0.6931472, %v2231_v19  ;;  %v3091_v19 = vld [vmem:[#allocation22_spill] sm:$0xff] }
 0x6f1   :  { %v807_v31 = vmul.f32 0.6931472, %v2233_v53 }
 0x6f2   :  { %v811_v14 = vadd.f32 %v809_v57, %v805_v54 }
 0x6f3   :  { %v810_v30 = vadd.f32 %v807_v31, %v804_v22  ;;  %v3092_v31 = vld [vmem:[#allocation24_spill] sm:$0xff] }
 0x6f4   :  { %v813_v47 = vadd.f32 %v3086_v45, %v811_v14 }
 0x6f5   :  { %v812_v50 = vadd.f32 %v3087_v27, %v810_v30  ;;  %v3094_v27 = vld [vmem:[#allocation28_spill] sm:$0xff] }
 0x6f6   :  { %v824_v39 = vmul.f32 %v2486_v42, %v813_v47 }
 0x6f7   :  { %v823_v40 = vmul.f32 %v2486_v42, %v812_v50 }
 0x6f8   :  { %v835_v35 = vadd.f32 %v2835_v8, %v824_v39 }
 0x6f9   :  { %v834_v13 = vadd.f32 %v2837_v52, %v823_v40 }
 0x6fa   :  { %v2909_v37 = vmul.f32 %v955_v25, %v835_v35 }
 0x6fb   :  { %v839_v63 = vmax.f32 %v834_v13, %v835_v35  ;;  %v2911_v9 = vmul.f32 %v955_v25, %v834_v13 }
 0x6fd   :  { %v840_v20 = vrot.slane %v839_v63, 4 }
 0x6ff   :  { %v841_v43 = vmax.f32 %v839_v63, %v840_v20 }
 0x701   :  { %v842_v58 = vrot.slane %v841_v43, 2 }
 0x703   :  { %v843_v16 = vmax.f32 %v841_v43, %v842_v58  ;;  %v3095_v43 = vld [vmem:[#allocation23_spill] sm:$0xff] }
 0x705   :  { %v844_v33 = vrot.slane %v843_v16, 1 }
 0x707   :  { %v2913_v49 = vmax.f32 %v843_v16, %v844_v33 }
 0x709   :  { %v846_v10 = vsub.f32 %v834_v13, %v2913_v49  ;;  %v847_v15 = vsub.f32 %v835_v35, %v2913_v49 }
 0x70b   :  { %v848_v26 = vmul.f32 1.442695, %v846_v10  ;;  %v850_v8 = vmul.f32 1.442695, %v847_v15 }
 0x70d   :  { %2234 = vpow2.f32 %v848_v26 }
 0x70e   :  { %2236 = vpow2.f32 %v850_v8 }
 0x717   :  { %v2235_v52 = vpop.eup %2234 }
 0x718   :  { %v2237_v55 = vpop.eup %2236 }
 0x719   :  { %v2145_v3 = vpack.c.bf16 %v2237_v55, %v2235_v52 }
 0x71b   :  { %2146 = vmatprep.subr.bf16.mxu0 %v2145_v3 }
 0x71c   :  { %2148 = vmatpush3.bf16.msra.mxu0 %v2145_v3 }
 0x71d   :  { %2154 = vmatprep.subr.msk.bf16.mxu0 %vm2153_vm7, %v2302_v23 }
 0x71f   :  { %2070 = vmatmul.mubr.msk.f32.vlgmr.msra.gmra.mrb[6].mxu0 %vm85_vm10, %v2770_v61  ;;  %v2078_v61 = vpop.f32.mrb[6].mxu1 }
 0x720   :  { %2156 = vmatpush3.bf16.msk.msra.mxu0 %vm2153_vm7, %v2302_v23  ;;  %2083 = vmatprep.mubr.msk.f32.mxu0 %vm85_vm10, %v2852_v60  ;;  %v1358_v59 = vpop.f32.mrb[7].mxu1  ;;  %v1818_v12 = vmul.f32 %v2078_v61, %v2664_v21 }
 0x721   :  { %2162 = vmatprep.subr.msk.bf16.mxu0 %vm2161_vm9, %v2302_v23  ;;  %v1817_v53 = vmul.f32 %v3091_v19, %v1358_v59  ;;  %v2092_v54 = vpop.f32.mrb[8].mxu1 }
 0x722   :  { %v1508_v57 = vpop.f32.mrb[9].mxu1  ;;  %v1822_v22 = vmul.f32 %v2092_v54, %v2676_v11 }
 0x723   :  { %2084 = vmatmul.mubr.msk.f32.vlgmr.msra.gmra.mrb[8].mxu0 %vm85_vm10, %v2859_v62  ;;  %v1821_v14 = vmul.f32 %v3092_v31, %v1508_v57  ;;  %v2106_v5 = vpop.f32.mrb[10].mxu1  ;;  %v930_v57 = vadd.f32 %v2913_v49, %v2748_v48  ;;  %v3098_v48 = vld [vmem:[#allocation29_spill] sm:$0xff] }
 0x724   :  { %2164 = vmatpush3.bf16.msk.msra.mxu0 %vm2161_vm9, %v2302_v23  ;;  %2097 = vmatprep.mubr.msk.f32.mxu0 %vm85_vm10, %v2852_v60  ;;  %v1826_v0 = vmul.f32 %v2106_v5, %v2690_v4  ;;  %v1832_v4 = vmul.f32 %v1818_v12, %v2428_v24  ;;  %v1836_v33 = vmul.f32 %v1822_v22, %v2455_v34 }
 0x725   :  { %2170 = vmatprep.subr.msk.bf16.mxu0 %vm2169_vm4, %v2302_v23  ;;  %v1835_v15 = vmul.f32 %v1821_v14, %v2455_v34  ;;  %v3097_v14 = vld [vmem:[#allocation27_spill] sm:$0xff] }
 0x726   :  { %v1840_v18 = vmul.f32 %v1826_v0, %v2482_v41 }
 0x727   :  { %2098 = vmatmul.mubr.msk.f32.vlgmr.msra.gmra.mrb[10].mxu0 %vm85_vm10, %v2859_v62 }
 0x728   :  { %2172 = vmatpush3.bf16.msk.msra.mxu0 %vm2169_vm4, %v2302_v23  ;;  %2111 = vmatprep.mubr.msk.f32.mxu0 %vm85_vm10, %v2852_v60  ;;  %v1658_v23 = vpop.f32.mrb[11].mxu1  ;;  %v3093_v60 = vld [vmem:[#allocation26_spill] sm:$0xff] }
 0x729   :  { %v1825_v30 = vmul.f32 %v3093_v60, %v1658_v23  ;;  %v2120_v45 = vpop.f32.mrb[12].mxu1  ;;  %v929_v23 = vadd.f32 %v2913_v49, %v2745_v51  ;;  %v1280_v60 = vrot.slane %v2762_v17, 4 }
 0x72a   :  { %v1830_v47 = vmul.f32 %v2120_v45, %v2703_v6  ;;  %v1831_v6 = vmul.f32 %v1817_v53, %v2428_v24 }
 0x72b   :  { %2112 = vmatmul.mubr.msk.f32.vlgmr.msra.gmra.mrb[12].mxu0 %vm85_vm10, %v2859_v62  ;;  %v1808_v62 = vpop.f32.mrb[13].mxu1  ;;  %v1281_v51 = vadd.f32 %v1280_v60, %v2762_v17 }
 0x72c   :  { %v1829_v21 = vmul.f32 %v3094_v27, %v1808_v62  ;;  %v1844_v50 = vmul.f32 %v1830_v47, %v2504_v46 }
 0x72e   :  { %v1843_v39 = vmul.f32 %v1829_v21, %v2504_v46 }
 0x7f2   :  { %v2071_v25 = vpop.f32.mrb[6].mxu0 }
 0x7f3   :  { %v928_v11 = vmax.f32 %v2071_v25, 1e-30  ;;  %v918_v40 = vpop.f32.mrb[7].mxu0  ;;  %v2248_v25 = vld [vmem:[#allocation2 + $0x70] sm:$0xff] }
 0x7f4   :  { %v927_v35 = vmax.f32 %v918_v40, 1e-30 }
 0x7f5   :  { %2238 = vlog2.f32 %v928_v11 }
 0x7f6   :  { %2240 = vlog2.f32 %v927_v35  ;;  %v2085_v13 = vpop.f32.mrb[8].mxu0 }
 0x7f7   :  { %v1820_v63 = vmul.f32 %v2085_v13, %v2670_v56  ;;  %v1433_v20 = vpop.f32.mrb[9].mxu0  ;;  %v3096_v56 = vld [vmem:[#allocation25_spill] sm:$0xff] }
 0x7f8   :  { %v1819_v58 = vmul.f32 %v3095_v43, %v1433_v20  ;;  %v1282_v20 = vrot.slane %v1281_v51, 2 }
 0x7f9   :  { %v1834_v16 = vmul.f32 %v1820_v63, %v2440_v29 }
 0x7fa   :  { %v1833_v10 = vmul.f32 %v1819_v58, %v2440_v29  ;;  %v2099_v26 = vpop.f32.mrb[10].mxu0  ;;  %v1839_v29 = vmul.f32 %v1825_v30, %v2482_v41 }
 0x7fb   :  { %v1851_v8 = vadd.f32 %v1834_v16, %v1832_v4  ;;  %v1824_v52 = vmul.f32 %v2099_v26, %v2684_v7  ;;  %v1583_v55 = vpop.f32.mrb[11].mxu0 }
 0x7fc   :  { %v1845_v3 = vadd.f32 %v1833_v10, %v1831_v6  ;;  %v1823_v2 = vmul.f32 %v3096_v56, %v1583_v55 }
 0x7fd   :  { %v1852_v32 = vadd.f32 %v1851_v8, %v1836_v33  ;;  %v1838_v24 = vmul.f32 %v1824_v52, %v2462_v36  ;;  %v1283_v33 = vadd.f32 %v1282_v20, %v1281_v51 }
 0x7fe   :  { %v1846_v61 = vadd.f32 %v1845_v3, %v1835_v15  ;;  %v1837_v59 = vmul.f32 %v1823_v2, %v2462_v36  ;;  %v2113_v12 = vpop.f32.mrb[12].mxu0 }
 0x7ff   :  { %v2239_v34 = vpop.eup %2238  ;;  %v1853_v19 = vadd.f32 %v1852_v32, %v1838_v24  ;;  %v1828_v53 = vmul.f32 %v2113_v12, %v2696_v1  ;;  %v1733_v7 = vpop.f32.mrb[13].mxu0  ;;  %v1284_v26 = vrot.slane %v1283_v33, 1 }
 0x800   :  { %v2241_v54 = vpop.eup %2240  ;;  %v934_v22 = vmul.f32 0.6931472, %v2239_v34  ;;  %v1847_v31 = vadd.f32 %v1846_v61, %v1837_v59  ;;  %v1827_v5 = vmul.f32 %v3097_v14, %v1733_v7 }
 0x801   :  { %v932_v36 = vmul.f32 0.6931472, %v2241_v54  ;;  %v1854_v0 = vadd.f32 %v1853_v19, %v1840_v18  ;;  %v1842_v41 = vmul.f32 %v1828_v53, %v2486_v42  ;;  %v1285_v55 = vadd.f32 %v1284_v26, %v1283_v33 }
 0x802   :  { %v936_v30 = vadd.f32 %v934_v22, %v930_v57  ;;  %v1848_v1 = vadd.f32 %v1847_v31, %v1839_v29  ;;  %v1841_v45 = vmul.f32 %v1827_v5, %v2486_v42 }
 0x803   :  { %v935_v62 = vadd.f32 %v932_v36, %v929_v23  ;;  %v1855_v47 = vadd.f32 %v1854_v0, %v1842_v41 }
 0x804   :  { %v938_v27 = vadd.f32 %v3098_v48, %v936_v30  ;;  %v1849_v21 = vadd.f32 %v1848_v1, %v1841_v45 }
 0x805   :  { %v937_v11 = vadd.f32 %v2248_v25, %v935_v62  ;;  %v1856_v40 = vadd.f32 %v1855_v47, %v1844_v50 }
 0x806   :  { %v949_v49 = vmul.f32 %v2504_v46, %v938_v27  ;;  %v1850_v35 = vadd.f32 %v1849_v21, %v1843_v39 }
 0x807   :  { %v948_v13 = vmul.f32 %v2504_v46, %v937_v11 }
 0x808   :  { %v960_v4 = vadd.f32 %v2909_v37, %v949_v49  ;;  %v1857_v63 = vadd.f32 %v1856_v40, %v1850_v35 }
 0x809   :  { %v959_v42 = vadd.f32 %v2911_v9, %v948_v13 }
 0x80a   :  { %v972_v6 = vadd.f32 %v2758_v44, %v960_v4  ;;  %v1858_v43 = vrot.slane %v1857_v63, 4 }
 0x80b   :  { %v971_v58 = vadd.f32 %v2756_v38, %v959_v42 }
 0x80c   :  { %v1859_v16 = vadd.f32 %v1858_v43, %v1857_v63 }
 0x80d   :  { %v973_v50 = vmax.f32 %v971_v58, %v972_v6 }
 0x80e   :  { %v1860_v17 = vrot.slane %v1859_v16, 2 }
 0x80f   :  { %v974_v10 = vrot.slane %v973_v50, 4 }
 0x810   :  { %v1861_v15 = vadd.f32 %v1860_v17, %v1859_v16 }
 0x811   :  { %v975_v39 = vmax.f32 %v973_v50, %v974_v10 }
 0x812   :  { %v1862_v46 = vrot.slane %v1861_v15, 1 }
 0x813   :  { %v976_v8 = vrot.slane %v975_v39, 2 }
 0x814   :  { %v1863_v37 = vadd.f32 %v1862_v46, %v1861_v15 }
 0x815   :  { %v977_v52 = vmax.f32 %v975_v39, %v976_v8 }
 0x816   :  { %v1865_v9 = vadd.f32 %v2765_v28, %v1863_v37 }
 0x817   :  { %v978_v3 = vrot.slane %v977_v52, 1 }
 0x818   :  { %v1866_v44 = vadd.f32 %v1865_v9, %v1285_v55 }
 0x819   :  { %v979_v56 = vmax.f32 %v977_v52, %v978_v3 }
 0x81b   :  { %v980_v2 = vsub.f32 %v971_v58, %v979_v56  ;;  %v981_v38 = vsub.f32 %v972_v6, %v979_v56 }
 0x81d   :  { %v982_v32 = vmul.f32 1.442695, %v980_v2  ;;  %v984_v24 = vmul.f32 1.442695, %v981_v38 }
 0x81f   :  { %2242 = vpow2.f32 %v982_v32 }
 0x820   :  { %2244 = vpow2.f32 %v984_v24 }
 0x829   :  { %v2243_v18 = vpop.eup %2242 }
 0x82a   :  { %v2245_v61 = vpop.eup %2244 }
 0x82b   :  { %v986_v59 = vadd.f32 %v2245_v61, %v2243_v18 }
 0x82d   :  { %v987_v29 = vrot.slane %v986_v59, 4 }
 0x82f   :  { %v988_v12 = vadd.f32 %v987_v29, %v986_v59 }
 0x831   :  { %v989_v34 = vrot.slane %v988_v12, 2 }
 0x833   :  { %v990_v19 = vadd.f32 %v989_v34, %v988_v12 }
 0x835   :  { %v991_v53 = vrot.slane %v990_v19, 1 }
 0x837   :  { %v992_v7 = vadd.f32 %v991_v53, %v990_v19 }
 0x839   :  { %2246 = vlog2.f32 %v992_v7 }
 0x843   :  { %v2247_v28 = vpop.eup %2246 }
 0x844   :  { %v994_v54 = vmul.f32 0.6931472, %v2247_v28 }
 0x846   :  { %v995_v57 = vadd.f32 %v994_v54, %v979_v56 }
 0x848   :  { %v1867_v22 = vsub.f32 %v1866_v44, %v995_v57 }
 0x84a   :  { %1868 = vst [vmem:[#allocation5] sm:$0x1] %v1867_v22 }
 0x84b   :  { %2282 = shalt.err (!%p2279_p12)
}
 0x84c   :  { %s2283_s6 = scalar_lea.hbm %s3017_s8, 16 }
 0x84d   :  { %p2284_p13 = scmp.ne.s32.totalorder %s3017_s8, %s2283_s6  ;;  %p2287_p0 = scmp.lt.u32.totalorder %s2283_s6, %s3017_s8 }
 0x84f   :  { %p2289_p1 = pnand %p2287_p0, %p2284_p13 }
 0x851   :  { %2292 = shalt.err (!%p2289_p1)
}
 0x852   :  { %1878 = dma.vmem_to_hbm [thread:$0]  %s1876_s27, 16, %s3017_s8, [#allocation4]  }
 0x853   :  { %2295 = dma.done.wait [#allocation4], 16  }
 0x854   :  { %2296 = vsyncadd [#allocation4], 4294967280 }
 0x855   :  { %1882 = vsyncpa [#allocation3], 1 }
 0x856   :  { %1883 = vsyncpa [#allocation4], 1 }

</bundles_post_ra>
